<compile_context>
chip_gen: v7x
topology: tpu7x:2x2x1
jax: 0.10.0
libtpu: 0.0.40
codegen_flags: <defaults>
</compile_context>

<pallas_src>
import math

import jax
import jax.numpy as jnp
from jax.experimental import pallas as pl
from jax.experimental.pallas import tpu as pltpu

# --------------------------- synthetic "bert" config ---------------------------
VOCAB = 64
MAX_POS = 32
HIDDEN = 32
N_HEADS = 2
HEAD_DIM = HIDDEN // N_HEADS
FFN = 64
N_LAYERS = 2
EPS = 1e-12

# Lane-padded sizes: last-dim multiples of 128 -> lane-dense (unmasked) stores and
# 128-aligned MXU tiles. Padded weight rows/cols and LN gamma/beta are zero, so
# padded lanes stay exactly 0 through the whole network.
HP = 128       # padded hidden
FP = 128       # padded FFN
OUT_P = 128    # padded QA-logit dim (real logits in lanes 0..1)


# --------------------------- small math helpers ---------------------------------
def _gelu(x):
    c = 0.7978845608028654  # sqrt(2/pi)
    return 0.5 * x * (1.0 + jnp.tanh(c * (x + 0.044715 * x * x * x)))


def _layernorm_ref(x, g, b):
    mu = jnp.mean(x, axis=-1, keepdims=True)
    var = jnp.mean((x - mu) * (x - mu), axis=-1, keepdims=True)
    return (x - mu) * jax.lax.rsqrt(var + EPS) * g + b


def _layernorm_padded(x, g, b):
    # x: (R, HP) f32 with lanes >= HIDDEN identically zero; g/b: (1, HP), zero-padded.
    # Normalization constants use the TRUE hidden size; padded lanes map to 0.
    inv_h = 1.0 / HIDDEN
    mu = jnp.sum(x, axis=-1, keepdims=True) * inv_h
    ex2 = jnp.sum(x * x, axis=-1, keepdims=True) * inv_h
    var = ex2 - mu * mu
    return (x - mu) * jax.lax.rsqrt(var + EPS) * g + b


# --------------------------- the fused Pallas kernel -----------------------------
def fused_qa_kernel(h_ref, bias_ref, wqkv_ref, bqkv_ref, wo_ref, bo_ref,
                    w1_ref, b1_ref, w2_ref, b2_ref, lng_ref, lnb_ref,
                    qaw_ref, qab_ref, out_ref):
    R = h_ref.shape[0]            # B*S rows (sublane-folded batch)
    S = bias_ref.shape[2]
    B = R // S
    scale = 1.0 / math.sqrt(HEAD_DIM)

    bias = bias_ref[...]                                        # (N_HEADS*B, 1, S), layer-invariant
    h = _layernorm_padded(h_ref[...], lng_ref[0], lnb_ref[0])   # embedding LayerNorm, (R, HP) f32

    for li in range(N_LAYERS):     # static unroll; stacked weights stay resident in VMEM
        hb = h.astype(jnp.bfloat16)

        # --- fused QKV projection: one (R,HP) x (HP,3*HP) matmul -----------------
        qkv = jnp.dot(hb, wqkv_ref[li],
                      preferred_element_type=jnp.float32) + bqkv_ref[li]   # (R, 3*HP) f32

        q3 = (qkv[:, 0:HP] * scale).reshape(B, S, HP)
        k3 = qkv[:, HP:2 * HP].reshape(B, S, HP)
        v3 = qkv[:, 2 * HP:3 * HP].reshape(B, S, HP)

        # All (head, batch) pairs in one batched matmul:  n = head*B + b
        qh = jnp.concatenate(
            [q3[:, :, hd * HEAD_DIM:(hd + 1) * HEAD_DIM] for hd in range(N_HEADS)], axis=0)
        kh = jnp.concatenate(
            [k3[:, :, hd * HEAD_DIM:(hd + 1) * HEAD_DIM] for hd in range(N_HEADS)], axis=0)
        vh = jnp.concatenate(
            [v3[:, :, hd * HEAD_DIM:(hd + 1) * HEAD_DIM] for hd in range(N_HEADS)], axis=0)

        s = jnp.einsum('nqd,nkd->nqk',
                       qh.astype(jnp.bfloat16), kh.astype(jnp.bfloat16),
                       preferred_element_type=jnp.float32) + bias           # (NB, S, S)
        s = s - jnp.max(s, axis=-1, keepdims=True)
        p = jnp.exp(s)
        p = p * pl.reciprocal(jnp.sum(p, axis=-1, keepdims=True), approx=True)

        ctx = jnp.einsum('nqk,nkd->nqd',
                         p.astype(jnp.bfloat16), vh.astype(jnp.bfloat16),
                         preferred_element_type=jnp.float32)                # (NB, S, D)
        ctx = jnp.concatenate([ctx[hd * B:(hd + 1) * B] for hd in range(N_HEADS)], axis=-1)
        ctx = ctx.reshape(R, HIDDEN)                                        # (R, HIDDEN)

        # --- attention output proj + residual + LN ------------------------------
        attn = jnp.dot(ctx.astype(jnp.bfloat16), wo_ref[li],
                       preferred_element_type=jnp.float32) + bo_ref[li]     # (R, HP)
        h1 = _layernorm_padded(h + attn, lng_ref[1 + 2 * li], lnb_ref[1 + 2 * li])

        # --- FFN + residual + LN -------------------------------------------------
        ff = jnp.dot(h1.astype(jnp.bfloat16), w1_ref[li],
                     preferred_element_type=jnp.float32) + b1_ref[li]       # (R, FP)
        ff = _gelu(ff)
        ff = jnp.dot(ff.astype(jnp.bfloat16), w2_ref[li],
                     preferred_element_type=jnp.float32) + b2_ref[li]       # (R, HP)
        h = _layernorm_padded(h1 + ff, lng_ref[2 + 2 * li], lnb_ref[2 + 2 * li])

    # --- QA head: (R, HP) x (HP, OUT_P), lane-dense (128-wide) store ------------
    out_ref[...] = (jnp.dot(h.astype(jnp.bfloat16), qaw_ref[...],
                            preferred_element_type=jnp.float32) + qab_ref[...])


# --------------------------- parameter init (synthetic, deterministic) -----------
def init_params(key):
    def dense(k, shape):
        return jax.random.normal(k, shape, jnp.float32) * 0.02

    keys = jax.random.split(key, 4 + N_LAYERS)
    params = {
        'word_emb': dense(keys[0], (VOCAB, HIDDEN)),
        'pos_emb': dense(keys[1], (MAX_POS, HIDDEN)),
        'type_emb': dense(keys[2], (2, HIDDEN)),
        'emb_ln_g': jnp.ones((1, 1, HIDDEN), jnp.float32),
        'emb_ln_b': jnp.zeros((1, 1, HIDDEN), jnp.float32),
        'qa_w': dense(keys[3], (HIDDEN, 2)),
        'qa_b': jnp.zeros((1, 1, 2), jnp.float32),
        'layers': [],
    }
    for li in range(N_LAYERS):
        k = jax.random.split(keys[4 + li], 6)
        params['layers'].append({
            'wq': dense(k[0], (HIDDEN, HIDDEN)), 'bq': jnp.zeros((1, 1, HIDDEN), jnp.float32),
            'wk': dense(k[1], (HIDDEN, HIDDEN)), 'bk': jnp.zeros((1, 1, HIDDEN), jnp.float32),
            'wv': dense(k[2], (HIDDEN, HIDDEN)), 'bv': jnp.zeros((1, 1, HIDDEN), jnp.float32),
            'wo': dense(k[3], (HIDDEN, HIDDEN)), 'bo': jnp.zeros((1, 1, HIDDEN), jnp.float32),
            'ln1_g': jnp.ones((1, 1, HIDDEN), jnp.float32), 'ln1_b': jnp.zeros((1, 1, HIDDEN), jnp.float32),
            'w1': dense(k[4], (HIDDEN, FFN)), 'b1': jnp.zeros((1, 1, FFN), jnp.float32),
            'w2': dense(k[5], (FFN, HIDDEN)), 'b2': jnp.zeros((1, 1, HIDDEN), jnp.float32),
            'ln2_g': jnp.ones((1, 1, HIDDEN), jnp.float32), 'ln2_b': jnp.zeros((1, 1, HIDDEN), jnp.float32),
        })
    return params


# --------------------------- pack: stack + lane-pad weights for the kernel -------
def pack_params(params):
    L, H = N_LAYERS, HIDDEN
    wqkv = jnp.zeros((L, HP, 3 * HP), jnp.float32)
    bqkv = jnp.zeros((L, 1, 3 * HP), jnp.float32)
    wo = jnp.zeros((L, H, HP), jnp.float32)
    bo = jnp.zeros((L, 1, HP), jnp.float32)
    w1 = jnp.zeros((L, HP, FP), jnp.float32)
    b1 = jnp.zeros((L, 1, FP), jnp.float32)
    w2 = jnp.zeros((L, FP, HP), jnp.float32)
    b2 = jnp.zeros((L, 1, HP), jnp.float32)
    ln_g = jnp.zeros((2 * L + 1, 1, HP), jnp.float32)   # padded gamma == 0 keeps pad lanes at 0
    ln_b = jnp.zeros((2 * L + 1, 1, HP), jnp.float32)

    ln_g = ln_g.at[0, 0, :H].set(params['emb_ln_g'].reshape(-1))
    ln_b = ln_b.at[0, 0, :H].set(params['emb_ln_b'].reshape(-1))
    for li, lp in enumerate(params['layers']):
        wqkv = wqkv.at[li, :H, 0:H].set(lp['wq'])
        wqkv = wqkv.at[li, :H, HP:HP + H].set(lp['wk'])
        wqkv = wqkv.at[li, :H, 2 * HP:2 * HP + H].set(lp['wv'])
        bqkv = bqkv.at[li, 0, 0:H].set(lp['bq'].reshape(-1))
        bqkv = bqkv.at[li, 0, HP:HP + H].set(lp['bk'].reshape(-1))
        bqkv = bqkv.at[li, 0, 2 * HP:2 * HP + H].set(lp['bv'].reshape(-1))
        wo = wo.at[li, :, :H].set(lp['wo'])
        bo = bo.at[li, 0, :H].set(lp['bo'].reshape(-1))
        w1 = w1.at[li, :H, :FFN].set(lp['w1'])
        b1 = b1.at[li, 0, :FFN].set(lp['b1'].reshape(-1))
        w2 = w2.at[li, :FFN, :H].set(lp['w2'])
        b2 = b2.at[li, 0, :H].set(lp['b2'].reshape(-1))
        ln_g = ln_g.at[1 + 2 * li, 0, :H].set(lp['ln1_g'].reshape(-1))
        ln_b = ln_b.at[1 + 2 * li, 0, :H].set(lp['ln1_b'].reshape(-1))
        ln_g = ln_g.at[2 + 2 * li, 0, :H].set(lp['ln2_g'].reshape(-1))
        ln_b = ln_b.at[2 + 2 * li, 0, :H].set(lp['ln2_b'].reshape(-1))

    qa_w = jnp.zeros((HP, OUT_P), jnp.float32).at[:H, :2].set(params['qa_w'])
    qa_b = jnp.zeros((1, OUT_P), jnp.float32).at[0, :2].set(params['qa_b'].reshape(-1))

    return {
        'word_emb': params['word_emb'], 'pos_emb': params['pos_emb'], 'type_emb': params['type_emb'],
        'wqkv': wqkv.astype(jnp.bfloat16), 'bqkv': bqkv,
        'wo': wo.astype(jnp.bfloat16), 'bo': bo,
        'w1': w1.astype(jnp.bfloat16), 'b1': b1,
        'w2': w2.astype(jnp.bfloat16), 'b2': b2,
        'ln_g': ln_g, 'ln_b': ln_b,
        'qa_w': qa_w.astype(jnp.bfloat16), 'qa_b': qa_b,
    }


# --------------------------- QAModel.forward (single fused pallas_call) ----------
@jax.jit
def qa_model_forward(packed, input_ids, attention_mask):
    B, S = input_ids.shape

    # Embedding lookup is glue (plain-JAX gather); fold batch into sublanes + pad lanes.
    h = (packed['word_emb'][input_ids]
         + packed['pos_emb'][:S][None, :, :]
         + packed['type_emb'][0][None, None, :]).astype(jnp.float32)
    h = jnp.pad(h.reshape(B * S, HIDDEN), ((0, 0), (0, HP - HIDDEN)))        # (B*S, HP)

    # Additive mask bias, precomputed once, expanded to (N_HEADS*B, 1, S) with n = head*B + b.
    bias = jnp.tile((1.0 - attention_mask.astype(jnp.float32)) * (-1e9),
                    (N_HEADS, 1))[:, None, :]

    vmem = pl.BlockSpec(memory_space=pltpu.MemorySpace.VMEM)
    out = pl.pallas_call(
        fused_qa_kernel,
        out_shape=jax.ShapeDtypeStruct((B * S, OUT_P), jnp.float32),
        in_specs=[vmem] * 14,
        out_specs=vmem,
    )(h, bias,
      packed['wqkv'], packed['bqkv'], packed['wo'], packed['bo'],
      packed['w1'], packed['b1'], packed['w2'], packed['b2'],
      packed['ln_g'], packed['ln_b'], packed['qa_w'], packed['qa_b'])

    logits = out[:, :2].reshape(B, S, 2)
    return logits[..., 0], logits[..., 1]       # split(1, dim=-1) + squeeze(-1)


# --------------------------- pure-JAX f32 reference for checking -----------------
def reference_forward(params, input_ids, attention_mask):
    B, S = input_ids.shape
    h = (params['word_emb'][input_ids]
         + params['pos_emb'][:S][None, :, :]
         + params['type_emb'][0][None, None, :]).astype(jnp.float32)
    h = _layernorm_ref(h, params['emb_ln_g'], params['emb_ln_b'])
    bias = (1.0 - attention_mask.astype(jnp.float32))[:, None, None, :] * (-1e9)
    for lp in params['layers']:
        q = h @ lp['wq'] + lp['bq']
        k = h @ lp['wk'] + lp['bk']
        v = h @ lp['wv'] + lp['bv']
        split = lambda x: x.reshape(B, S, N_HEADS, HEAD_DIM).transpose(0, 2, 1, 3)
        qh, kh, vh = split(q), split(k), split(v)
        s = jnp.einsum('bnqd,bnkd->bnqk', qh, kh) / math.sqrt(HEAD_DIM) + bias
        p = jax.nn.softmax(s, axis=-1)
        ctx = jnp.einsum('bnqk,bnkd->bnqd', p, vh).transpose(0, 2, 1, 3).reshape(B, S, HIDDEN)
        h1 = _layernorm_ref(h + ctx @ lp['wo'] + lp['bo'], lp['ln1_g'], lp['ln1_b'])
        ff = _gelu(h1 @ lp['w1'] + lp['b1']) @ lp['w2'] + lp['b2']
        h = _layernorm_ref(h1 + ff, lp['ln2_g'], lp['ln2_b'])
    logits = h @ params['qa_w'] + params['qa_b']
    return logits[..., 0], logits[..., 1]


# --------------------------- main -------------------------------------------------
if __name__ == "__main__":
    key = jax.random.PRNGKey(0)
    pkey, ikey = jax.random.split(key)

    params = init_params(pkey)
    packed = pack_params(params)

    B, S = 2, 8
    input_ids = jax.random.randint(ikey, (B, S), 0, VOCAB, dtype=jnp.int32)
    attention_mask = jnp.array([[1, 1, 1, 1, 1, 1, 1, 1],
                                [1, 1, 1, 1, 1, 1, 0, 0]], dtype=jnp.int32)

    start_logits, end_logits = qa_model_forward(packed, input_ids, attention_mask)
    jax.block_until_ready((start_logits, end_logits))

    ref_start, ref_end = reference_forward(params, input_ids, attention_mask)
    assert start_logits.shape == (B, S) and end_logits.shape == (B, S)
    assert jnp.allclose(start_logits, ref_start, atol=2e-2, rtol=2e-2)
    assert jnp.allclose(end_logits, ref_end, atol=2e-2, rtol=2e-2)

    print("KERNEL_OK")
</pallas_src>

<mosaic_0001>
module attributes {stable_mosaic.version = 11 : i64} {
  func.func @fused_qa_kernel(%arg0: memref<16x128xf32, #tpu.memory_space<vmem>>, %arg1: memref<4x1x8xf32, #tpu.memory_space<vmem>>, %arg2: memref<2x128x384xbf16, #tpu.memory_space<vmem>>, %arg3: memref<2x1x384xf32, #tpu.memory_space<vmem>>, %arg4: memref<2x32x128xbf16, #tpu.memory_space<vmem>>, %arg5: memref<2x1x128xf32, #tpu.memory_space<vmem>>, %arg6: memref<2x128x128xbf16, #tpu.memory_space<vmem>>, %arg7: memref<2x1x128xf32, #tpu.memory_space<vmem>>, %arg8: memref<2x128x128xbf16, #tpu.memory_space<vmem>>, %arg9: memref<2x1x128xf32, #tpu.memory_space<vmem>>, %arg10: memref<5x1x128xf32, #tpu.memory_space<vmem>>, %arg11: memref<5x1x128xf32, #tpu.memory_space<vmem>>, %arg12: memref<128x128xbf16, #tpu.memory_space<vmem>>, %arg13: memref<1x128xf32, #tpu.memory_space<vmem>>, %arg14: memref<16x128xf32, #tpu.memory_space<vmem>>) attributes {dimension_semantics = [], scalar_prefetch = 0 : i64, scratch_operands = 0 : i64, tpu.core_type = #tpu.core_type<tc>} {
    %c0 = arith.constant 0 : index
    %c0_0 = arith.constant 0 : index
    %c0_1 = arith.constant 0 : index
    %0 = vector.load %arg1[%c0, %c0_0, %c0_1] : memref<4x1x8xf32, #tpu.memory_space<vmem>>, vector<4x1x8xf32>
    %c0_2 = arith.constant 0 : index
    %c0_3 = arith.constant 0 : index
    %1 = vector.load %arg0[%c0_2, %c0_3] : memref<16x128xf32, #tpu.memory_space<vmem>>, vector<16x128xf32>
    %c0_4 = arith.constant 0 : index
    %c0_5 = arith.constant 0 : index
    %c0_6 = arith.constant 0 : index
    %2 = vector.load %arg10[%c0_4, %c0_5, %c0_6] : memref<5x1x128xf32, #tpu.memory_space<vmem>>, vector<1x1x128xf32>
    %3 = vector.shape_cast %2 : vector<1x1x128xf32> to vector<1x128xf32>
    %c0_7 = arith.constant 0 : index
    %c0_8 = arith.constant 0 : index
    %c0_9 = arith.constant 0 : index
    %4 = vector.load %arg11[%c0_7, %c0_8, %c0_9] : memref<5x1x128xf32, #tpu.memory_space<vmem>>, vector<1x1x128xf32>
    %5 = vector.shape_cast %4 : vector<1x1x128xf32> to vector<1x128xf32>
    %cst = arith.constant dense<0.000000e+00> : vector<16xf32>
    %6 = vector.multi_reduction <add>, %1, %cst [1] : vector<16x128xf32> to vector<16xf32>
    %7 = vector.shape_cast %6 : vector<16xf32> to vector<16x1xf32>
    %cst_10 = arith.constant 3.125000e-02 : f32
    %8 = vector.broadcast %cst_10 : f32 to vector<16x1xf32>
    %9 = arith.mulf %7, %8 : vector<16x1xf32>
    %10 = arith.mulf %1, %1 : vector<16x128xf32>
    %cst_11 = arith.constant dense<0.000000e+00> : vector<16xf32>
    %11 = vector.multi_reduction <add>, %10, %cst_11 [1] : vector<16x128xf32> to vector<16xf32>
    %12 = vector.shape_cast %11 : vector<16xf32> to vector<16x1xf32>
    %cst_12 = arith.constant 3.125000e-02 : f32
    %13 = vector.broadcast %cst_12 : f32 to vector<16x1xf32>
    %14 = arith.mulf %12, %13 : vector<16x1xf32>
    %15 = arith.mulf %9, %9 : vector<16x1xf32>
    %16 = arith.subf %14, %15 : vector<16x1xf32>
    %17 = vector.broadcast %9 : vector<16x1xf32> to vector<16x128xf32>
    %18 = arith.subf %1, %17 : vector<16x128xf32>
    %cst_13 = arith.constant 9.99999996E-13 : f32
    %19 = vector.broadcast %cst_13 : f32 to vector<16x1xf32>
    %20 = arith.addf %16, %19 : vector<16x1xf32>
    %21 = math.rsqrt %20 : vector<16x1xf32>
    %22 = vector.broadcast %21 : vector<16x1xf32> to vector<16x128xf32>
    %23 = arith.mulf %18, %22 : vector<16x128xf32>
    %24 = vector.broadcast %3 : vector<1x128xf32> to vector<16x128xf32>
    %25 = arith.mulf %23, %24 : vector<16x128xf32>
    %26 = vector.broadcast %5 : vector<1x128xf32> to vector<16x128xf32>
    %27 = arith.addf %25, %26 : vector<16x128xf32>
    %28 = arith.truncf %27 : vector<16x128xf32> to vector<16x128xbf16>
    %c0_14 = arith.constant 0 : index
    %c0_15 = arith.constant 0 : index
    %c0_16 = arith.constant 0 : index
    %29 = vector.load %arg2[%c0_14, %c0_15, %c0_16] : memref<2x128x384xbf16, #tpu.memory_space<vmem>>, vector<1x128x384xbf16>
    %30 = vector.shape_cast %29 : vector<1x128x384xbf16> to vector<128x384xbf16>
    %cst_17 = arith.constant dense<0.000000e+00> : vector<16x384xf32>
    %31 = tpu.matmul %28, %30, %cst_17 {dimension_numbers = #tpu.dot_dimension_numbers<[1], [0], [0], [1], [0, 0, 1, 1], [], []>} : vector<16x128xbf16>, vector<128x384xbf16>, vector<16x384xf32> -> vector<16x384xf32>
    %c0_18 = arith.constant 0 : index
    %c0_19 = arith.constant 0 : index
    %c0_20 = arith.constant 0 : index
    %32 = vector.load %arg3[%c0_18, %c0_19, %c0_20] : memref<2x1x384xf32, #tpu.memory_space<vmem>>, vector<1x1x384xf32>
    %33 = vector.shape_cast %32 : vector<1x1x384xf32> to vector<1x384xf32>
    %34 = vector.broadcast %33 : vector<1x384xf32> to vector<16x384xf32>
    %35 = arith.addf %31, %34 : vector<16x384xf32>
    %36 = vector.extract_strided_slice %35 {offsets = [0, 0], sizes = [16, 128], strides = [1, 1]} : vector<16x384xf32> to vector<16x128xf32>
    %cst_21 = arith.constant 2.500000e-01 : f32
    %37 = vector.broadcast %cst_21 : f32 to vector<16x128xf32>
    %38 = arith.mulf %36, %37 : vector<16x128xf32>
    %39 = vector.shape_cast %38 : vector<16x128xf32> to vector<2x8x128xf32>
    %40 = vector.extract_strided_slice %35 {offsets = [0, 128], sizes = [16, 128], strides = [1, 1]} : vector<16x384xf32> to vector<16x128xf32>
    %41 = vector.shape_cast %40 : vector<16x128xf32> to vector<2x8x128xf32>
    %42 = vector.extract_strided_slice %35 {offsets = [0, 256], sizes = [16, 128], strides = [1, 1]} : vector<16x384xf32> to vector<16x128xf32>
    %43 = vector.shape_cast %42 : vector<16x128xf32> to vector<2x8x128xf32>
    %44 = vector.extract_strided_slice %39 {offsets = [0, 0, 0], sizes = [2, 8, 16], strides = [1, 1, 1]} : vector<2x8x128xf32> to vector<2x8x16xf32>
    %45 = vector.extract_strided_slice %39 {offsets = [0, 0, 16], sizes = [2, 8, 16], strides = [1, 1, 1]} : vector<2x8x128xf32> to vector<2x8x16xf32>
    %46 = tpu.concatenate %44, %45 in 0 : vector<2x8x16xf32>, vector<2x8x16xf32> -> vector<4x8x16xf32>
    %47 = vector.extract_strided_slice %41 {offsets = [0, 0, 0], sizes = [2, 8, 16], strides = [1, 1, 1]} : vector<2x8x128xf32> to vector<2x8x16xf32>
    %48 = vector.extract_strided_slice %41 {offsets = [0, 0, 16], sizes = [2, 8, 16], strides = [1, 1, 1]} : vector<2x8x128xf32> to vector<2x8x16xf32>
    %49 = tpu.concatenate %47, %48 in 0 : vector<2x8x16xf32>, vector<2x8x16xf32> -> vector<4x8x16xf32>
    %50 = vector.extract_strided_slice %43 {offsets = [0, 0, 0], sizes = [2, 8, 16], strides = [1, 1, 1]} : vector<2x8x128xf32> to vector<2x8x16xf32>
    %51 = vector.extract_strided_slice %43 {offsets = [0, 0, 16], sizes = [2, 8, 16], strides = [1, 1, 1]} : vector<2x8x128xf32> to vector<2x8x16xf32>
    %52 = tpu.concatenate %50, %51 in 0 : vector<2x8x16xf32>, vector<2x8x16xf32> -> vector<4x8x16xf32>
    %53 = arith.truncf %46 : vector<4x8x16xf32> to vector<4x8x16xbf16>
    %54 = arith.truncf %49 : vector<4x8x16xf32> to vector<4x8x16xbf16>
    "tpu.trace_start"() <{level = 10 : i32, message = "nqd,nkd->nqk"}> : () -> ()
    %cst_22 = arith.constant dense<0.000000e+00> : vector<4x8x8xf32>
    %55 = tpu.matmul %53, %54, %cst_22 {dimension_numbers = #tpu.dot_dimension_numbers<[2], [2], [1], [1], [0, 0, 0, 1, 1, 1], [0], [0]>} : vector<4x8x16xbf16>, vector<4x8x16xbf16>, vector<4x8x8xf32> -> vector<4x8x8xf32>
    "tpu.trace_stop"() : () -> ()
    %56 = vector.broadcast %0 : vector<4x1x8xf32> to vector<4x8x8xf32>
    %57 = arith.addf %55, %56 : vector<4x8x8xf32>
    %cst_23 = arith.constant dense<0xFF800000> : vector<4x8xf32>
    %58 = vector.multi_reduction <maximumf>, %57, %cst_23 [2] : vector<4x8x8xf32> to vector<4x8xf32>
    %59 = vector.shape_cast %58 : vector<4x8xf32> to vector<4x8x1xf32>
    %60 = vector.broadcast %59 : vector<4x8x1xf32> to vector<4x8x8xf32>
    %61 = arith.subf %57, %60 : vector<4x8x8xf32>
    %62 = math.exp %61 : vector<4x8x8xf32>
    %cst_24 = arith.constant dense<0.000000e+00> : vector<4x8xf32>
    %63 = vector.multi_reduction <add>, %62, %cst_24 [2] : vector<4x8x8xf32> to vector<4x8xf32>
    %64 = vector.shape_cast %63 : vector<4x8xf32> to vector<4x8x1xf32>
    %65 = tpu.reciprocal %64 {approx = true} : vector<4x8x1xf32> -> vector<4x8x1xf32>
    %66 = vector.broadcast %65 : vector<4x8x1xf32> to vector<4x8x8xf32>
    %67 = arith.mulf %62, %66 : vector<4x8x8xf32>
    %68 = arith.truncf %67 : vector<4x8x8xf32> to vector<4x8x8xbf16>
    %69 = arith.truncf %52 : vector<4x8x16xf32> to vector<4x8x16xbf16>
    "tpu.trace_start"() <{level = 10 : i32, message = "nqk,nkd->nqd"}> : () -> ()
    %cst_25 = arith.constant dense<0.000000e+00> : vector<4x8x16xf32>
    %70 = tpu.matmul %68, %69, %cst_25 {dimension_numbers = #tpu.dot_dimension_numbers<[2], [1], [1], [2], [0, 0, 0, 1, 1, 2], [0], [0]>} : vector<4x8x8xbf16>, vector<4x8x16xbf16>, vector<4x8x16xf32> -> vector<4x8x16xf32>
    "tpu.trace_stop"() : () -> ()
    %71 = vector.extract_strided_slice %70 {offsets = [0, 0, 0], sizes = [2, 8, 16], strides = [1, 1, 1]} : vector<4x8x16xf32> to vector<2x8x16xf32>
    %72 = vector.extract_strided_slice %70 {offsets = [2, 0, 0], sizes = [2, 8, 16], strides = [1, 1, 1]} : vector<4x8x16xf32> to vector<2x8x16xf32>
    %73 = tpu.concatenate %71, %72 in 2 : vector<2x8x16xf32>, vector<2x8x16xf32> -> vector<2x8x32xf32>
    %74 = vector.shape_cast %73 : vector<2x8x32xf32> to vector<16x32xf32>
    %75 = arith.truncf %74 : vector<16x32xf32> to vector<16x32xbf16>
    %c0_26 = arith.constant 0 : index
    %c0_27 = arith.constant 0 : index
    %c0_28 = arith.constant 0 : index
    %76 = vector.load %arg4[%c0_26, %c0_27, %c0_28] : memref<2x32x128xbf16, #tpu.memory_space<vmem>>, vector<1x32x128xbf16>
    %77 = vector.shape_cast %76 : vector<1x32x128xbf16> to vector<32x128xbf16>
    %cst_29 = arith.constant dense<0.000000e+00> : vector<16x128xf32>
    %78 = tpu.matmul %75, %77, %cst_29 {dimension_numbers = #tpu.dot_dimension_numbers<[1], [0], [0], [1], [0, 0, 1, 1], [], []>} : vector<16x32xbf16>, vector<32x128xbf16>, vector<16x128xf32> -> vector<16x128xf32>
    %c0_30 = arith.constant 0 : index
    %c0_31 = arith.constant 0 : index
    %c0_32 = arith.constant 0 : index
    %79 = vector.load %arg5[%c0_30, %c0_31, %c0_32] : memref<2x1x128xf32, #tpu.memory_space<vmem>>, vector<1x1x128xf32>
    %80 = vector.shape_cast %79 : vector<1x1x128xf32> to vector<1x128xf32>
    %81 = vector.broadcast %80 : vector<1x128xf32> to vector<16x128xf32>
    %82 = arith.addf %78, %81 : vector<16x128xf32>
    %83 = arith.addf %27, %82 : vector<16x128xf32>
    %c1 = arith.constant 1 : index
    %c0_33 = arith.constant 0 : index
    %c0_34 = arith.constant 0 : index
    %84 = vector.load %arg10[%c1, %c0_33, %c0_34] : memref<5x1x128xf32, #tpu.memory_space<vmem>>, vector<1x1x128xf32>
    %85 = vector.shape_cast %84 : vector<1x1x128xf32> to vector<1x128xf32>
    %c1_35 = arith.constant 1 : index
    %c0_36 = arith.constant 0 : index
    %c0_37 = arith.constant 0 : index
    %86 = vector.load %arg11[%c1_35, %c0_36, %c0_37] : memref<5x1x128xf32, #tpu.memory_space<vmem>>, vector<1x1x128xf32>
    %87 = vector.shape_cast %86 : vector<1x1x128xf32> to vector<1x128xf32>
    %cst_38 = arith.constant dense<0.000000e+00> : vector<16xf32>
    %88 = vector.multi_reduction <add>, %83, %cst_38 [1] : vector<16x128xf32> to vector<16xf32>
    %89 = vector.shape_cast %88 : vector<16xf32> to vector<16x1xf32>
    %cst_39 = arith.constant 3.125000e-02 : f32
    %90 = vector.broadcast %cst_39 : f32 to vector<16x1xf32>
    %91 = arith.mulf %89, %90 : vector<16x1xf32>
    %92 = arith.mulf %83, %83 : vector<16x128xf32>
    %cst_40 = arith.constant dense<0.000000e+00> : vector<16xf32>
    %93 = vector.multi_reduction <add>, %92, %cst_40 [1] : vector<16x128xf32> to vector<16xf32>
    %94 = vector.shape_cast %93 : vector<16xf32> to vector<16x1xf32>
    %cst_41 = arith.constant 3.125000e-02 : f32
    %95 = vector.broadcast %cst_41 : f32 to vector<16x1xf32>
    %96 = arith.mulf %94, %95 : vector<16x1xf32>
    %97 = arith.mulf %91, %91 : vector<16x1xf32>
    %98 = arith.subf %96, %97 : vector<16x1xf32>
    %99 = vector.broadcast %91 : vector<16x1xf32> to vector<16x128xf32>
    %100 = arith.subf %83, %99 : vector<16x128xf32>
    %cst_42 = arith.constant 9.99999996E-13 : f32
    %101 = vector.broadcast %cst_42 : f32 to vector<16x1xf32>
    %102 = arith.addf %98, %101 : vector<16x1xf32>
    %103 = math.rsqrt %102 : vector<16x1xf32>
    %104 = vector.broadcast %103 : vector<16x1xf32> to vector<16x128xf32>
    %105 = arith.mulf %100, %104 : vector<16x128xf32>
    %106 = vector.broadcast %85 : vector<1x128xf32> to vector<16x128xf32>
    %107 = arith.mulf %105, %106 : vector<16x128xf32>
    %108 = vector.broadcast %87 : vector<1x128xf32> to vector<16x128xf32>
    %109 = arith.addf %107, %108 : vector<16x128xf32>
    %110 = arith.truncf %109 : vector<16x128xf32> to vector<16x128xbf16>
    %c0_43 = arith.constant 0 : index
    %c0_44 = arith.constant 0 : index
    %c0_45 = arith.constant 0 : index
    %111 = vector.load %arg6[%c0_43, %c0_44, %c0_45] : memref<2x128x128xbf16, #tpu.memory_space<vmem>>, vector<1x128x128xbf16>
    %112 = vector.shape_cast %111 : vector<1x128x128xbf16> to vector<128x128xbf16>
    %cst_46 = arith.constant dense<0.000000e+00> : vector<16x128xf32>
    %113 = tpu.matmul %110, %112, %cst_46 {dimension_numbers = #tpu.dot_dimension_numbers<[1], [0], [0], [1], [0, 0, 1, 1], [], []>} : vector<16x128xbf16>, vector<128x128xbf16>, vector<16x128xf32> -> vector<16x128xf32>
    %c0_47 = arith.constant 0 : index
    %c0_48 = arith.constant 0 : index
    %c0_49 = arith.constant 0 : index
    %114 = vector.load %arg7[%c0_47, %c0_48, %c0_49] : memref<2x1x128xf32, #tpu.memory_space<vmem>>, vector<1x1x128xf32>
    %115 = vector.shape_cast %114 : vector<1x1x128xf32> to vector<1x128xf32>
    %116 = vector.broadcast %115 : vector<1x128xf32> to vector<16x128xf32>
    %117 = arith.addf %113, %116 : vector<16x128xf32>
    %cst_50 = arith.constant 5.000000e-01 : f32
    %118 = vector.broadcast %cst_50 : f32 to vector<16x128xf32>
    %119 = arith.mulf %118, %117 : vector<16x128xf32>
    %cst_51 = arith.constant 4.471500e-02 : f32
    %120 = vector.broadcast %cst_51 : f32 to vector<16x128xf32>
    %121 = arith.mulf %120, %117 : vector<16x128xf32>
    %122 = arith.mulf %121, %117 : vector<16x128xf32>
    %123 = arith.mulf %122, %117 : vector<16x128xf32>
    %124 = arith.addf %117, %123 : vector<16x128xf32>
    %cst_52 = arith.constant 0.797884583 : f32
    %125 = vector.broadcast %cst_52 : f32 to vector<16x128xf32>
    %126 = arith.mulf %125, %124 : vector<16x128xf32>
    %127 = math.tanh %126 : vector<16x128xf32>
    %cst_53 = arith.constant 1.000000e+00 : f32
    %128 = vector.broadcast %cst_53 : f32 to vector<16x128xf32>
    %129 = arith.addf %128, %127 : vector<16x128xf32>
    %130 = arith.mulf %119, %129 : vector<16x128xf32>
    %131 = arith.truncf %130 : vector<16x128xf32> to vector<16x128xbf16>
    %c0_54 = arith.constant 0 : index
    %c0_55 = arith.constant 0 : index
    %c0_56 = arith.constant 0 : index
    %132 = vector.load %arg8[%c0_54, %c0_55, %c0_56] : memref<2x128x128xbf16, #tpu.memory_space<vmem>>, vector<1x128x128xbf16>
    %133 = vector.shape_cast %132 : vector<1x128x128xbf16> to vector<128x128xbf16>
    %cst_57 = arith.constant dense<0.000000e+00> : vector<16x128xf32>
    %134 = tpu.matmul %131, %133, %cst_57 {dimension_numbers = #tpu.dot_dimension_numbers<[1], [0], [0], [1], [0, 0, 1, 1], [], []>} : vector<16x128xbf16>, vector<128x128xbf16>, vector<16x128xf32> -> vector<16x128xf32>
    %c0_58 = arith.constant 0 : index
    %c0_59 = arith.constant 0 : index
    %c0_60 = arith.constant 0 : index
    %135 = vector.load %arg9[%c0_58, %c0_59, %c0_60] : memref<2x1x128xf32, #tpu.memory_space<vmem>>, vector<1x1x128xf32>
    %136 = vector.shape_cast %135 : vector<1x1x128xf32> to vector<1x128xf32>
    %137 = vector.broadcast %136 : vector<1x128xf32> to vector<16x128xf32>
    %138 = arith.addf %134, %137 : vector<16x128xf32>
    %139 = arith.addf %109, %138 : vector<16x128xf32>
    %c2 = arith.constant 2 : index
    %c0_61 = arith.constant 0 : index
    %c0_62 = arith.constant 0 : index
    %140 = vector.load %arg10[%c2, %c0_61, %c0_62] : memref<5x1x128xf32, #tpu.memory_space<vmem>>, vector<1x1x128xf32>
    %141 = vector.shape_cast %140 : vector<1x1x128xf32> to vector<1x128xf32>
    %c2_63 = arith.constant 2 : index
    %c0_64 = arith.constant 0 : index
    %c0_65 = arith.constant 0 : index
    %142 = vector.load %arg11[%c2_63, %c0_64, %c0_65] : memref<5x1x128xf32, #tpu.memory_space<vmem>>, vector<1x1x128xf32>
    %143 = vector.shape_cast %142 : vector<1x1x128xf32> to vector<1x128xf32>
    %cst_66 = arith.constant dense<0.000000e+00> : vector<16xf32>
    %144 = vector.multi_reduction <add>, %139, %cst_66 [1] : vector<16x128xf32> to vector<16xf32>
    %145 = vector.shape_cast %144 : vector<16xf32> to vector<16x1xf32>
    %cst_67 = arith.constant 3.125000e-02 : f32
    %146 = vector.broadcast %cst_67 : f32 to vector<16x1xf32>
    %147 = arith.mulf %145, %146 : vector<16x1xf32>
    %148 = arith.mulf %139, %139 : vector<16x128xf32>
    %cst_68 = arith.constant dense<0.000000e+00> : vector<16xf32>
    %149 = vector.multi_reduction <add>, %148, %cst_68 [1] : vector<16x128xf32> to vector<16xf32>
    %150 = vector.shape_cast %149 : vector<16xf32> to vector<16x1xf32>
    %cst_69 = arith.constant 3.125000e-02 : f32
    %151 = vector.broadcast %cst_69 : f32 to vector<16x1xf32>
    %152 = arith.mulf %150, %151 : vector<16x1xf32>
    %153 = arith.mulf %147, %147 : vector<16x1xf32>
    %154 = arith.subf %152, %153 : vector<16x1xf32>
    %155 = vector.broadcast %147 : vector<16x1xf32> to vector<16x128xf32>
    %156 = arith.subf %139, %155 : vector<16x128xf32>
    %cst_70 = arith.constant 9.99999996E-13 : f32
    %157 = vector.broadcast %cst_70 : f32 to vector<16x1xf32>
    %158 = arith.addf %154, %157 : vector<16x1xf32>
    %159 = math.rsqrt %158 : vector<16x1xf32>
    %160 = vector.broadcast %159 : vector<16x1xf32> to vector<16x128xf32>
    %161 = arith.mulf %156, %160 : vector<16x128xf32>
    %162 = vector.broadcast %141 : vector<1x128xf32> to vector<16x128xf32>
    %163 = arith.mulf %161, %162 : vector<16x128xf32>
    %164 = vector.broadcast %143 : vector<1x128xf32> to vector<16x128xf32>
    %165 = arith.addf %163, %164 : vector<16x128xf32>
    %166 = arith.truncf %165 : vector<16x128xf32> to vector<16x128xbf16>
    %c1_71 = arith.constant 1 : index
    %c0_72 = arith.constant 0 : index
    %c0_73 = arith.constant 0 : index
    %167 = vector.load %arg2[%c1_71, %c0_72, %c0_73] : memref<2x128x384xbf16, #tpu.memory_space<vmem>>, vector<1x128x384xbf16>
    %168 = vector.shape_cast %167 : vector<1x128x384xbf16> to vector<128x384xbf16>
    %cst_74 = arith.constant dense<0.000000e+00> : vector<16x384xf32>
    %169 = tpu.matmul %166, %168, %cst_74 {dimension_numbers = #tpu.dot_dimension_numbers<[1], [0], [0], [1], [0, 0, 1, 1], [], []>} : vector<16x128xbf16>, vector<128x384xbf16>, vector<16x384xf32> -> vector<16x384xf32>
    %c1_75 = arith.constant 1 : index
    %c0_76 = arith.constant 0 : index
    %c0_77 = arith.constant 0 : index
    %170 = vector.load %arg3[%c1_75, %c0_76, %c0_77] : memref<2x1x384xf32, #tpu.memory_space<vmem>>, vector<1x1x384xf32>
    %171 = vector.shape_cast %170 : vector<1x1x384xf32> to vector<1x384xf32>
    %172 = vector.broadcast %171 : vector<1x384xf32> to vector<16x384xf32>
    %173 = arith.addf %169, %172 : vector<16x384xf32>
    %174 = vector.extract_strided_slice %173 {offsets = [0, 0], sizes = [16, 128], strides = [1, 1]} : vector<16x384xf32> to vector<16x128xf32>
    %cst_78 = arith.constant 2.500000e-01 : f32
    %175 = vector.broadcast %cst_78 : f32 to vector<16x128xf32>
    %176 = arith.mulf %174, %175 : vector<16x128xf32>
    %177 = vector.shape_cast %176 : vector<16x128xf32> to vector<2x8x128xf32>
    %178 = vector.extract_strided_slice %173 {offsets = [0, 128], sizes = [16, 128], strides = [1, 1]} : vector<16x384xf32> to vector<16x128xf32>
    %179 = vector.shape_cast %178 : vector<16x128xf32> to vector<2x8x128xf32>
    %180 = vector.extract_strided_slice %173 {offsets = [0, 256], sizes = [16, 128], strides = [1, 1]} : vector<16x384xf32> to vector<16x128xf32>
    %181 = vector.shape_cast %180 : vector<16x128xf32> to vector<2x8x128xf32>
    %182 = vector.extract_strided_slice %177 {offsets = [0, 0, 0], sizes = [2, 8, 16], strides = [1, 1, 1]} : vector<2x8x128xf32> to vector<2x8x16xf32>
    %183 = vector.extract_strided_slice %177 {offsets = [0, 0, 16], sizes = [2, 8, 16], strides = [1, 1, 1]} : vector<2x8x128xf32> to vector<2x8x16xf32>
    %184 = tpu.concatenate %182, %183 in 0 : vector<2x8x16xf32>, vector<2x8x16xf32> -> vector<4x8x16xf32>
    %185 = vector.extract_strided_slice %179 {offsets = [0, 0, 0], sizes = [2, 8, 16], strides = [1, 1, 1]} : vector<2x8x128xf32> to vector<2x8x16xf32>
    %186 = vector.extract_strided_slice %179 {offsets = [0, 0, 16], sizes = [2, 8, 16], strides = [1, 1, 1]} : vector<2x8x128xf32> to vector<2x8x16xf32>
    %187 = tpu.concatenate %185, %186 in 0 : vector<2x8x16xf32>, vector<2x8x16xf32> -> vector<4x8x16xf32>
    %188 = vector.extract_strided_slice %181 {offsets = [0, 0, 0], sizes = [2, 8, 16], strides = [1, 1, 1]} : vector<2x8x128xf32> to vector<2x8x16xf32>
    %189 = vector.extract_strided_slice %181 {offsets = [0, 0, 16], sizes = [2, 8, 16], strides = [1, 1, 1]} : vector<2x8x128xf32> to vector<2x8x16xf32>
    %190 = tpu.concatenate %188, %189 in 0 : vector<2x8x16xf32>, vector<2x8x16xf32> -> vector<4x8x16xf32>
    %191 = arith.truncf %184 : vector<4x8x16xf32> to vector<4x8x16xbf16>
    %192 = arith.truncf %187 : vector<4x8x16xf32> to vector<4x8x16xbf16>
    "tpu.trace_start"() <{level = 10 : i32, message = "nqd,nkd->nqk"}> : () -> ()
    %cst_79 = arith.constant dense<0.000000e+00> : vector<4x8x8xf32>
    %193 = tpu.matmul %191, %192, %cst_79 {dimension_numbers = #tpu.dot_dimension_numbers<[2], [2], [1], [1], [0, 0, 0, 1, 1, 1], [0], [0]>} : vector<4x8x16xbf16>, vector<4x8x16xbf16>, vector<4x8x8xf32> -> vector<4x8x8xf32>
    "tpu.trace_stop"() : () -> ()
    %194 = vector.broadcast %0 : vector<4x1x8xf32> to vector<4x8x8xf32>
    %195 = arith.addf %193, %194 : vector<4x8x8xf32>
    %cst_80 = arith.constant dense<0xFF800000> : vector<4x8xf32>
    %196 = vector.multi_reduction <maximumf>, %195, %cst_80 [2] : vector<4x8x8xf32> to vector<4x8xf32>
    %197 = vector.shape_cast %196 : vector<4x8xf32> to vector<4x8x1xf32>
    %198 = vector.broadcast %197 : vector<4x8x1xf32> to vector<4x8x8xf32>
    %199 = arith.subf %195, %198 : vector<4x8x8xf32>
    %200 = math.exp %199 : vector<4x8x8xf32>
    %cst_81 = arith.constant dense<0.000000e+00> : vector<4x8xf32>
    %201 = vector.multi_reduction <add>, %200, %cst_81 [2] : vector<4x8x8xf32> to vector<4x8xf32>
    %202 = vector.shape_cast %201 : vector<4x8xf32> to vector<4x8x1xf32>
    %203 = tpu.reciprocal %202 {approx = true} : vector<4x8x1xf32> -> vector<4x8x1xf32>
    %204 = vector.broadcast %203 : vector<4x8x1xf32> to vector<4x8x8xf32>
    %205 = arith.mulf %200, %204 : vector<4x8x8xf32>
    %206 = arith.truncf %205 : vector<4x8x8xf32> to vector<4x8x8xbf16>
    %207 = arith.truncf %190 : vector<4x8x16xf32> to vector<4x8x16xbf16>
    "tpu.trace_start"() <{level = 10 : i32, message = "nqk,nkd->nqd"}> : () -> ()
    %cst_82 = arith.constant dense<0.000000e+00> : vector<4x8x16xf32>
    %208 = tpu.matmul %206, %207, %cst_82 {dimension_numbers = #tpu.dot_dimension_numbers<[2], [1], [1], [2], [0, 0, 0, 1, 1, 2], [0], [0]>} : vector<4x8x8xbf16>, vector<4x8x16xbf16>, vector<4x8x16xf32> -> vector<4x8x16xf32>
    "tpu.trace_stop"() : () -> ()
    %209 = vector.extract_strided_slice %208 {offsets = [0, 0, 0], sizes = [2, 8, 16], strides = [1, 1, 1]} : vector<4x8x16xf32> to vector<2x8x16xf32>
    %210 = vector.extract_strided_slice %208 {offsets = [2, 0, 0], sizes = [2, 8, 16], strides = [1, 1, 1]} : vector<4x8x16xf32> to vector<2x8x16xf32>
    %211 = tpu.concatenate %209, %210 in 2 : vector<2x8x16xf32>, vector<2x8x16xf32> -> vector<2x8x32xf32>
    %212 = vector.shape_cast %211 : vector<2x8x32xf32> to vector<16x32xf32>
    %213 = arith.truncf %212 : vector<16x32xf32> to vector<16x32xbf16>
    %c1_83 = arith.constant 1 : index
    %c0_84 = arith.constant 0 : index
    %c0_85 = arith.constant 0 : index
    %214 = vector.load %arg4[%c1_83, %c0_84, %c0_85] : memref<2x32x128xbf16, #tpu.memory_space<vmem>>, vector<1x32x128xbf16>
    %215 = vector.shape_cast %214 : vector<1x32x128xbf16> to vector<32x128xbf16>
    %cst_86 = arith.constant dense<0.000000e+00> : vector<16x128xf32>
    %216 = tpu.matmul %213, %215, %cst_86 {dimension_numbers = #tpu.dot_dimension_numbers<[1], [0], [0], [1], [0, 0, 1, 1], [], []>} : vector<16x32xbf16>, vector<32x128xbf16>, vector<16x128xf32> -> vector<16x128xf32>
    %c1_87 = arith.constant 1 : index
    %c0_88 = arith.constant 0 : index
    %c0_89 = arith.constant 0 : index
    %217 = vector.load %arg5[%c1_87, %c0_88, %c0_89] : memref<2x1x128xf32, #tpu.memory_space<vmem>>, vector<1x1x128xf32>
    %218 = vector.shape_cast %217 : vector<1x1x128xf32> to vector<1x128xf32>
    %219 = vector.broadcast %218 : vector<1x128xf32> to vector<16x128xf32>
    %220 = arith.addf %216, %219 : vector<16x128xf32>
    %221 = arith.addf %165, %220 : vector<16x128xf32>
    %c3 = arith.constant 3 : index
    %c0_90 = arith.constant 0 : index
    %c0_91 = arith.constant 0 : index
    %222 = vector.load %arg10[%c3, %c0_90, %c0_91] : memref<5x1x128xf32, #tpu.memory_space<vmem>>, vector<1x1x128xf32>
    %223 = vector.shape_cast %222 : vector<1x1x128xf32> to vector<1x128xf32>
    %c3_92 = arith.constant 3 : index
    %c0_93 = arith.constant 0 : index
    %c0_94 = arith.constant 0 : index
    %224 = vector.load %arg11[%c3_92, %c0_93, %c0_94] : memref<5x1x128xf32, #tpu.memory_space<vmem>>, vector<1x1x128xf32>
    %225 = vector.shape_cast %224 : vector<1x1x128xf32> to vector<1x128xf32>
    %cst_95 = arith.constant dense<0.000000e+00> : vector<16xf32>
    %226 = vector.multi_reduction <add>, %221, %cst_95 [1] : vector<16x128xf32> to vector<16xf32>
    %227 = vector.shape_cast %226 : vector<16xf32> to vector<16x1xf32>
    %cst_96 = arith.constant 3.125000e-02 : f32
    %228 = vector.broadcast %cst_96 : f32 to vector<16x1xf32>
    %229 = arith.mulf %227, %228 : vector<16x1xf32>
    %230 = arith.mulf %221, %221 : vector<16x128xf32>
    %cst_97 = arith.constant dense<0.000000e+00> : vector<16xf32>
    %231 = vector.multi_reduction <add>, %230, %cst_97 [1] : vector<16x128xf32> to vector<16xf32>
    %232 = vector.shape_cast %231 : vector<16xf32> to vector<16x1xf32>
    %cst_98 = arith.constant 3.125000e-02 : f32
    %233 = vector.broadcast %cst_98 : f32 to vector<16x1xf32>
    %234 = arith.mulf %232, %233 : vector<16x1xf32>
    %235 = arith.mulf %229, %229 : vector<16x1xf32>
    %236 = arith.subf %234, %235 : vector<16x1xf32>
    %237 = vector.broadcast %229 : vector<16x1xf32> to vector<16x128xf32>
    %238 = arith.subf %221, %237 : vector<16x128xf32>
    %cst_99 = arith.constant 9.99999996E-13 : f32
    %239 = vector.broadcast %cst_99 : f32 to vector<16x1xf32>
    %240 = arith.addf %236, %239 : vector<16x1xf32>
    %241 = math.rsqrt %240 : vector<16x1xf32>
    %242 = vector.broadcast %241 : vector<16x1xf32> to vector<16x128xf32>
    %243 = arith.mulf %238, %242 : vector<16x128xf32>
    %244 = vector.broadcast %223 : vector<1x128xf32> to vector<16x128xf32>
    %245 = arith.mulf %243, %244 : vector<16x128xf32>
    %246 = vector.broadcast %225 : vector<1x128xf32> to vector<16x128xf32>
    %247 = arith.addf %245, %246 : vector<16x128xf32>
    %248 = arith.truncf %247 : vector<16x128xf32> to vector<16x128xbf16>
    %c1_100 = arith.constant 1 : index
    %c0_101 = arith.constant 0 : index
    %c0_102 = arith.constant 0 : index
    %249 = vector.load %arg6[%c1_100, %c0_101, %c0_102] : memref<2x128x128xbf16, #tpu.memory_space<vmem>>, vector<1x128x128xbf16>
    %250 = vector.shape_cast %249 : vector<1x128x128xbf16> to vector<128x128xbf16>
    %cst_103 = arith.constant dense<0.000000e+00> : vector<16x128xf32>
    %251 = tpu.matmul %248, %250, %cst_103 {dimension_numbers = #tpu.dot_dimension_numbers<[1], [0], [0], [1], [0, 0, 1, 1], [], []>} : vector<16x128xbf16>, vector<128x128xbf16>, vector<16x128xf32> -> vector<16x128xf32>
    %c1_104 = arith.constant 1 : index
    %c0_105 = arith.constant 0 : index
    %c0_106 = arith.constant 0 : index
    %252 = vector.load %arg7[%c1_104, %c0_105, %c0_106] : memref<2x1x128xf32, #tpu.memory_space<vmem>>, vector<1x1x128xf32>
    %253 = vector.shape_cast %252 : vector<1x1x128xf32> to vector<1x128xf32>
    %254 = vector.broadcast %253 : vector<1x128xf32> to vector<16x128xf32>
    %255 = arith.addf %251, %254 : vector<16x128xf32>
    %cst_107 = arith.constant 5.000000e-01 : f32
    %256 = vector.broadcast %cst_107 : f32 to vector<16x128xf32>
    %257 = arith.mulf %256, %255 : vector<16x128xf32>
    %cst_108 = arith.constant 4.471500e-02 : f32
    %258 = vector.broadcast %cst_108 : f32 to vector<16x128xf32>
    %259 = arith.mulf %258, %255 : vector<16x128xf32>
    %260 = arith.mulf %259, %255 : vector<16x128xf32>
    %261 = arith.mulf %260, %255 : vector<16x128xf32>
    %262 = arith.addf %255, %261 : vector<16x128xf32>
    %cst_109 = arith.constant 0.797884583 : f32
    %263 = vector.broadcast %cst_109 : f32 to vector<16x128xf32>
    %264 = arith.mulf %263, %262 : vector<16x128xf32>
    %265 = math.tanh %264 : vector<16x128xf32>
    %cst_110 = arith.constant 1.000000e+00 : f32
    %266 = vector.broadcast %cst_110 : f32 to vector<16x128xf32>
    %267 = arith.addf %266, %265 : vector<16x128xf32>
    %268 = arith.mulf %257, %267 : vector<16x128xf32>
    %269 = arith.truncf %268 : vector<16x128xf32> to vector<16x128xbf16>
    %c1_111 = arith.constant 1 : index
    %c0_112 = arith.constant 0 : index
    %c0_113 = arith.constant 0 : index
    %270 = vector.load %arg8[%c1_111, %c0_112, %c0_113] : memref<2x128x128xbf16, #tpu.memory_space<vmem>>, vector<1x128x128xbf16>
    %271 = vector.shape_cast %270 : vector<1x128x128xbf16> to vector<128x128xbf16>
    %cst_114 = arith.constant dense<0.000000e+00> : vector<16x128xf32>
    %272 = tpu.matmul %269, %271, %cst_114 {dimension_numbers = #tpu.dot_dimension_numbers<[1], [0], [0], [1], [0, 0, 1, 1], [], []>} : vector<16x128xbf16>, vector<128x128xbf16>, vector<16x128xf32> -> vector<16x128xf32>
    %c1_115 = arith.constant 1 : index
    %c0_116 = arith.constant 0 : index
    %c0_117 = arith.constant 0 : index
    %273 = vector.load %arg9[%c1_115, %c0_116, %c0_117] : memref<2x1x128xf32, #tpu.memory_space<vmem>>, vector<1x1x128xf32>
    %274 = vector.shape_cast %273 : vector<1x1x128xf32> to vector<1x128xf32>
    %275 = vector.broadcast %274 : vector<1x128xf32> to vector<16x128xf32>
    %276 = arith.addf %272, %275 : vector<16x128xf32>
    %277 = arith.addf %247, %276 : vector<16x128xf32>
    %c4 = arith.constant 4 : index
    %c0_118 = arith.constant 0 : index
    %c0_119 = arith.constant 0 : index
    %278 = vector.load %arg10[%c4, %c0_118, %c0_119] : memref<5x1x128xf32, #tpu.memory_space<vmem>>, vector<1x1x128xf32>
    %279 = vector.shape_cast %278 : vector<1x1x128xf32> to vector<1x128xf32>
    %c4_120 = arith.constant 4 : index
    %c0_121 = arith.constant 0 : index
    %c0_122 = arith.constant 0 : index
    %280 = vector.load %arg11[%c4_120, %c0_121, %c0_122] : memref<5x1x128xf32, #tpu.memory_space<vmem>>, vector<1x1x128xf32>
    %281 = vector.shape_cast %280 : vector<1x1x128xf32> to vector<1x128xf32>
    %cst_123 = arith.constant dense<0.000000e+00> : vector<16xf32>
    %282 = vector.multi_reduction <add>, %277, %cst_123 [1] : vector<16x128xf32> to vector<16xf32>
    %283 = vector.shape_cast %282 : vector<16xf32> to vector<16x1xf32>
    %cst_124 = arith.constant 3.125000e-02 : f32
    %284 = vector.broadcast %cst_124 : f32 to vector<16x1xf32>
    %285 = arith.mulf %283, %284 : vector<16x1xf32>
    %286 = arith.mulf %277, %277 : vector<16x128xf32>
    %cst_125 = arith.constant dense<0.000000e+00> : vector<16xf32>
    %287 = vector.multi_reduction <add>, %286, %cst_125 [1] : vector<16x128xf32> to vector<16xf32>
    %288 = vector.shape_cast %287 : vector<16xf32> to vector<16x1xf32>
    %cst_126 = arith.constant 3.125000e-02 : f32
    %289 = vector.broadcast %cst_126 : f32 to vector<16x1xf32>
    %290 = arith.mulf %288, %289 : vector<16x1xf32>
    %291 = arith.mulf %285, %285 : vector<16x1xf32>
    %292 = arith.subf %290, %291 : vector<16x1xf32>
    %293 = vector.broadcast %285 : vector<16x1xf32> to vector<16x128xf32>
    %294 = arith.subf %277, %293 : vector<16x128xf32>
    %cst_127 = arith.constant 9.99999996E-13 : f32
    %295 = vector.broadcast %cst_127 : f32 to vector<16x1xf32>
    %296 = arith.addf %292, %295 : vector<16x1xf32>
    %297 = math.rsqrt %296 : vector<16x1xf32>
    %298 = vector.broadcast %297 : vector<16x1xf32> to vector<16x128xf32>
    %299 = arith.mulf %294, %298 : vector<16x128xf32>
    %300 = vector.broadcast %279 : vector<1x128xf32> to vector<16x128xf32>
    %301 = arith.mulf %299, %300 : vector<16x128xf32>
    %302 = vector.broadcast %281 : vector<1x128xf32> to vector<16x128xf32>
    %303 = arith.addf %301, %302 : vector<16x128xf32>
    %304 = arith.truncf %303 : vector<16x128xf32> to vector<16x128xbf16>
    %c0_128 = arith.constant 0 : index
    %c0_129 = arith.constant 0 : index
    %305 = vector.load %arg12[%c0_128, %c0_129] : memref<128x128xbf16, #tpu.memory_space<vmem>>, vector<128x128xbf16>
    %cst_130 = arith.constant dense<0.000000e+00> : vector<16x128xf32>
    %306 = tpu.matmul %304, %305, %cst_130 {dimension_numbers = #tpu.dot_dimension_numbers<[1], [0], [0], [1], [0, 0, 1, 1], [], []>} : vector<16x128xbf16>, vector<128x128xbf16>, vector<16x128xf32> -> vector<16x128xf32>
    %c0_131 = arith.constant 0 : index
    %c0_132 = arith.constant 0 : index
    %307 = vector.load %arg13[%c0_131, %c0_132] : memref<1x128xf32, #tpu.memory_space<vmem>>, vector<1x128xf32>
    %308 = vector.broadcast %307 : vector<1x128xf32> to vector<16x128xf32>
    %309 = arith.addf %306, %308 : vector<16x128xf32>
    %c0_133 = arith.constant 0 : index
    %c0_134 = arith.constant 0 : index
    %310 = vector.load %arg14[%c0_133, %c0_134] : memref<16x128xf32, #tpu.memory_space<vmem>>, vector<16x128xf32>
    tpu.vector_store %arg14[%c0_133, %c0_134], %309 {strides = array<i32>} : memref<16x128xf32, #tpu.memory_space<vmem>>, vector<16x128xf32>,
    return
  }
}

</mosaic_0001>

<bundles_post_ra>
// kernel: qa_model_forward.1
= control target key start
LH: loop header
LB: loop body
LE: loop exit
PB: predicated region body
PF: predicated region fallthrough
CT: control target
= control target key end

     0   :  { %19 = vsyncpa [#allocation3], 0  ;;  %s3303_s29 = smov [#allocation2]   ;;  %s3913_s0 = inlined_call_operand.vmem [shape: f32[16,128], index: 0, kind: input, shape index: {}]   ;;  %s3914_s1 = inlined_call_operand.vmem [shape: f32[4,1,8], index: 1, kind: input, shape index: {}]   ;;  %s3915_s2 = inlined_call_operand.hbm [shape: bf16[2,128,384], index: 2, kind: input, shape index: {}]   ;;  %s3916_s3 = inlined_call_operand.vmem [shape: f32[2,1,384], index: 3, kind: input, shape index: {}]   ;;  %s3917_s4 = inlined_call_operand.vmem [shape: bf16[2,32,128], index: 4, kind: input, shape index: {}]   ;;  %s3918_s5 = inlined_call_operand.vmem [shape: f32[2,1,128], index: 5, kind: input, shape index: {}]   ;;  %s3919_s6 = inlined_call_operand.vmem [shape: bf16[2,128,128], index: 6, kind: input, shape index: {}]   ;;  %s3920_s7 = inlined_call_operand.vmem [shape: f32[2,1,128], index: 7, kind: input, shape index: {}]   ;;  %s3921_s8 = inlined_call_operand.vmem [shape: bf16[2,128,128], index: 8, kind: input, shape index: {}]   ;;  %s3922_s9 = inlined_call_operand.vmem [shape: f32[2,1,128], index: 9, kind: input, shape index: {}]   ;;  %s3923_s10 = inlined_call_operand.vmem [shape: f32[5,1,128], index: 10, kind: input, shape index: {}]   ;;  %s3924_s11 = inlined_call_operand.vmem [shape: f32[5,1,128], index: 11, kind: input, shape index: {}]   ;;  %s3925_s12 = inlined_call_operand.vmem [shape: bf16[128,128], index: 12, kind: input, shape index: {}]   ;;  %s3926_s13 = inlined_call_operand.vmem [shape: f32[1,128], index: 13, kind: input, shape index: {}]   ;;  %s3927_s14 = inlined_call_operand.vmem [shape: f32[16,128], index: 14, kind: output, shape index: {}]  }
   0x1   :  { %s29_s30 = sshll.u32 %s3303_s29, 4  ;;  %s3279_s17 = scalar_lea.hbm %s3915_s2, 6144  ;;  %s30_s30 = int_to_ptr.vmem [resolvable:$true] %s29_s30 }
   0x2   :  { %p3280_p0 = scmp.ne.s32.totalorder %s3915_s2, %s3279_s17  ;;  %p3283_p1 = scmp.lt.u32.totalorder %s3279_s17, %s3915_s2 }
   0x4   :  { %p3285_p2 = pnand %p3283_p1, %p3280_p0 }
   0x6   :  { %3288 = shalt.err (!%p3285_p2)
}
   0x7   :  { %s3289_s22 = scalar_lea.vmem %s30_s30, 6144  ;;  %p3294_p4 = scmp.lt.s32.totalorder %s30_s30, %s30_s30 }
   0x8   :  { %p3290_p3 = scmp.ne.s32.totalorder %s30_s30, %s3289_s22  ;;  %p3295_p5 = scmp.lt.s32.totalorder %s3289_s22, %s3289_s22 }
   0xa   :  { %p3296_p6 = por %p3295_p5, %p3294_p4 }
   0xc   :  { %p3297_p7 = pnand %p3296_p6, %p3290_p3 }
   0xe   :  { %3300 = shalt.err (!%p3297_p7)
}
   0xf   :  { %s3304_s23 = smov 192   ;;  %s3305_s24 = smov 12  }
  0x10   :  { %35 = dma.hbm_to_vmem [thread:$0]  %s3915_s2, 6144, %s30_s30, [#allocation3], %s3304_s23, %s3304_s23, %s3305_s24  }
  0x11   :  { %3301 = dma.done.wait [#allocation3], 6144  }
  0x12   :  { %3302 = vsyncadd [#allocation3], 4294961152  ;;  %v3306_v0 = vmov 0.0   ;;  %v3402_v1 = vld [vmem:[%s3913_s0] sm:$0xff]  ;;  %v3407_v2 = vld [vmem:[%s3913_s0 + $0x8] sm:$0xff]  ;;  %v3307_v26 = vmov 0   ;;  %v147_v57 = vlaneseq }
  0x13   :  { %2816 = vmatprep.subr.bf16.mxu1 %v3306_v0  ;;  %70 = vadd.xlane.f32.xlu0 %v3402_v1  ;;  %v76_v3 = vmul.f32 %v3402_v1, %v3402_v1  ;;  %v3111_v4 = vld [vmem:[#allocation2 + $0x4] ss:$12 sps:$4 sm:$0xff]   ;;  %v77_v5 = vmul.f32 %v3407_v2, %v3407_v2  ;;  %v3113_v6 = vld [vmem:[#allocation2] ss:$12 sps:$4 sm:$0xff]   ;;  %v3114_v7 = vld [vmem:[#allocation2 + $0x8] ss:$12 sps:$4 sm:$0xff]  }
  0x14   :  { %290 = vmatprep.subr.bf16.mxu0 %v3111_v4  ;;  %2817 = vmatpush3.bf16.msra.mxu1 %v3114_v7  ;;  %v3115_v8 = vld [vmem:[#allocation2 + $0x1c] ss:$12 sps:$4 sm:$0xff]   ;;  %v3117_v9 = vld [vmem:[#allocation2 + $0x18] ss:$12 sps:$4 sm:$0xff]   ;;  %v3118_v10 = vld [vmem:[#allocation2 + $0x20] ss:$12 sps:$4 sm:$0xff]  }
  0x15   :  { %78 = vadd.xlane.f32.xlu1 %v76_v3  ;;  %291 = vmatpush1.bf16.msra.mxu0 %v3113_v6  ;;  %v3119_v11 = vld [vmem:[#allocation2 + $0x34] ss:$12 sps:$4 sm:$0xff]   ;;  %v3121_v12 = vld [vmem:[#allocation2 + $0x30] ss:$12 sps:$4 sm:$0xff]   ;;  %v3122_v13 = vld [vmem:[#allocation2 + $0x38] ss:$12 sps:$4 sm:$0xff]  }
  0x16   :  { %2818 = vmatprep.subr.bf16.mxu1 %v3306_v0  ;;  %292 = vmatprep.subr.bf16.mxu0 %v3115_v8  ;;  %v3123_v14 = vld [vmem:[#allocation2 + $0x4c] ss:$12 sps:$4 sm:$0xff]   ;;  %v3125_v15 = vld [vmem:[#allocation2 + $0x48] ss:$12 sps:$4 sm:$0xff]   ;;  %v3126_v16 = vld [vmem:[#allocation2 + $0x50] ss:$12 sps:$4 sm:$0xff]  }
  0x17   :  { %72 = vadd.xlane.f32.xlu0 %v3407_v2  ;;  %v3127_v17 = vld [vmem:[#allocation2 + $0x64] ss:$12 sps:$4 sm:$0xff]   ;;  %v3129_v18 = vld [vmem:[#allocation2 + $0x60] ss:$12 sps:$4 sm:$0xff]   ;;  %v3130_v19 = vld [vmem:[#allocation2 + $0x68] ss:$12 sps:$4 sm:$0xff]   ;;  %322 = vmatprep.mubr.bf16.mxu0 %v3307_v26 }
  0x18   :  { %2819 = vmatpush3.bf16.msra.mxu1 %v3118_v10  ;;  %v3131_v20 = vld [vmem:[#allocation2 + $0x7c] ss:$12 sps:$4 sm:$0xff]   ;;  %v3133_v21 = vld [vmem:[#allocation2 + $0x78] ss:$12 sps:$4 sm:$0xff]   ;;  %v3134_v22 = vld [vmem:[#allocation2 + $0x80] ss:$12 sps:$4 sm:$0xff]  }
  0x19   :  { %80 = vadd.xlane.f32.xlu1 %v77_v5  ;;  %293 = vmatpush1.bf16.msra.mxu0 %v3117_v9  ;;  %v3135_v23 = vld [vmem:[#allocation2 + $0x94] ss:$12 sps:$4 sm:$0xff]   ;;  %v3137_v24 = vld [vmem:[#allocation2 + $0x90] ss:$12 sps:$4 sm:$0xff]   ;;  %v3138_v25 = vld [vmem:[#allocation2 + $0x98] ss:$12 sps:$4 sm:$0xff]  }
  0x1a   :  { %2820 = vmatprep.subr.bf16.mxu1 %v3306_v0  ;;  %294 = vmatprep.subr.bf16.mxu0 %v3119_v11  ;;  %vm3308_vm0 = vmmov 0   ;;  %v3139_v27 = vld [vmem:[#allocation2 + $0xac] ss:$12 sps:$4 sm:$0xff]   ;;  %v3141_v28 = vld [vmem:[#allocation2 + $0xa8] ss:$12 sps:$4 sm:$0xff]   ;;  %v3445_v58 = vshrl.u32 %v147_v57, 7 }
  0x1b   :  { %2832 = vmatprep.mubr.msk.bf16.mxu1 %vm3308_vm0, %v3306_v0  ;;  %v3142_v29 = vld [vmem:[#allocation2 + $0xb0] ss:$12 sps:$4 sm:$0xff]   ;;  %v2536_v47 = vld [vmem:[%s3923_s10] ss:$0 sm:$0xff]  ;;  %vm673_vm1 = vcmask 1043456   ;;  %vm432_vm2 = vcmask 130048  }
  0x1c   :  { %2821 = vmatpush3.bf16.msra.mxu1 %v3122_v13  ;;  %v2537_v52 = vld [vmem:[%s3924_s11] ss:$0 sm:$0xff]  ;;  %v149_v59 = vsub.s32 0, %v3445_v58  ;;  %v157_v60 = vsub.s32 2, %v3445_v58  ;;  %v153_v62 = vsub.s32 1, %v3445_v58  ;;  %s3309_s19 = smov 112  }
  0x1d   :  { %295 = vmatpush1.bf16.msra.mxu0 %v3121_v12  ;;  %2822 = vmatprep.subr.bf16.mxu1 %v3306_v0  ;;  %v145_v61 = vld [vmem:[%s3916_s3] sm:$0x7]  ;;  %vm617_vm3 = vcmask 64512   ;;  %s3310_s0 = smov 16   ;;  %vm889_vm4 = vcmask 261120  }
  0x1e   :  { %296 = vmatprep.subr.bf16.mxu0 %v3123_v14  ;;  %v150_v63 = vrot.slane %v145_v61, %v149_v59 }
  0x20   :  { %2823 = vmatpush3.bf16.msra.mxu1 %v3126_v16 }
  0x21   :  { %297 = vmatpush1.bf16.msra.mxu0 %v3125_v15  ;;  %2824 = vmatprep.subr.bf16.mxu1 %v3306_v0 }
  0x22   :  { %298 = vmatprep.subr.bf16.mxu0 %v3127_v17 }
  0x24   :  { %2825 = vmatpush3.bf16.msra.mxu1 %v3130_v19 }
  0x25   :  { %299 = vmatpush1.bf16.msra.mxu0 %v3129_v18  ;;  %2826 = vmatprep.subr.bf16.mxu1 %v3306_v0 }
  0x26   :  { %300 = vmatprep.subr.bf16.mxu0 %v3131_v20 }
  0x28   :  { %2827 = vmatpush3.bf16.msra.mxu1 %v3134_v22 }
  0x29   :  { %301 = vmatpush1.bf16.msra.mxu0 %v3133_v21  ;;  %2828 = vmatprep.subr.bf16.mxu1 %v3306_v0 }
  0x2a   :  { %302 = vmatprep.subr.bf16.mxu0 %v3135_v23 }
  0x2c   :  { %2829 = vmatpush3.bf16.msra.mxu1 %v3138_v25 }
  0x2d   :  { %303 = vmatpush1.bf16.msra.mxu0 %v3137_v24  ;;  %2830 = vmatprep.subr.bf16.mxu1 %v3306_v0 }
  0x2e   :  { %304 = vmatprep.subr.bf16.mxu0 %v3139_v27 }
  0x30   :  { %2831 = vmatpush3.bf16.msra.mxu1 %v3142_v29 }
  0x31   :  { %305 = vmatpush1.bf16.msra.mxu0 %v3141_v28  ;;  %2836 = vmatprep.subr.bf16.mxu1 %v3306_v0 }
  0x32   :  { %2860 = vmatprep.subr.bf16.mxu0 %v3306_v0 }
  0xa0   :  { %v71_v30 = vpop.xlane.xlu0 %70 }
  0xa1   :  { %v74_v31 = vmul.f32 0.03125, %v71_v30 }
  0xa2   :  { %v79_v32 = vpop.xlane.xlu1 %78 }
  0xa3   :  { %v84_v33 = vmul.f32 %v74_v31, %v74_v31  ;;  %v82_v34 = vmul.f32 0.03125, %v79_v32  ;;  %v88_v44 = vsub.f32 %v3402_v1, %v74_v31  ;;  %v158_v1 = vrot.slane %v145_v61, %v157_v60 }
  0xa4   :  { %v73_v35 = vpop.xlane.xlu0 %72 }
  0xa5   :  { %v86_v36 = vsub.f32 %v82_v34, %v84_v33  ;;  %v75_v37 = vmul.f32 0.03125, %v73_v35 }
  0xa6   :  { %v81_v38 = vpop.xlane.xlu1 %80 }
  0xa7   :  { %v90_v39 = vadd.f32 1e-12, %v86_v36  ;;  %v85_v40 = vmul.f32 %v75_v37, %v75_v37  ;;  %v83_v41 = vmul.f32 0.03125, %v81_v38  ;;  %v89_v48 = vsub.f32 %v3407_v2, %v75_v37 }
  0xa8   :  { %v154_v2 = vrot.slane %v145_v61, %v153_v62 }
  0xa9   :  { %3219 = vrsqrt.f32 %v90_v39  ;;  %v87_v42 = vsub.f32 %v83_v41, %v85_v40 }
  0xab   :  { %v91_v43 = vadd.f32 1e-12, %v87_v42 }
  0xad   :  { %3221 = vrsqrt.f32 %v91_v43  ;;  %v3499_v43 = vld [vmem:[%s3914_s1] ss:$0 sm:$0xff] }
  0xb3   :  { %v3220_v45 = vpop.eup %3219 }
  0xb4   :  { %v94_v46 = vmul.f32 %v3220_v45, %v88_v44 }
  0xb6   :  { %v102_v51 = vmul.f32 %v2536_v47, %v94_v46 }
  0xb7   :  { %v3222_v49 = vpop.eup %3221 }
  0xb8   :  { %v95_v50 = vmul.f32 %v3222_v49, %v89_v48  ;;  %v3435_v54 = vadd.f32 %v2537_v52, %v102_v51 }
  0xba   :  { %v103_v53 = vmul.f32 %v2536_v47, %v95_v50  ;;  %v3506_v50 = vld [vmem:[%s3914_s1 + $0x1] ss:$0 sm:$0xff] }
  0xbc   :  { %v3437_v55 = vadd.f32 %v2537_v52, %v103_v53 }
  0xbe   :  { %v112_v56 = vpack.c.bf16 %v3437_v55, %v3435_v54 }
  0xc0   :  { %323 = vmatmul.mubr.bf16.vlgmr.msra.gmra.mrb[0].mxu0 %v112_v56  ;;  %2833 = vmatmul.mubr.bf16.vlgmr.msra.gmra.mrb[0].mxu1 %v112_v56 }
  0xc1   :  { %2838 = vmatprep.mubr.msk.bf16.mxu1 %vm3308_vm0, %v3306_v0  ;;  %2862 = vmatprep.mubr.msk.bf16.mxu0 %vm3308_vm0, %v3306_v0 }
 0x193   :  { %v324_v3 = vpop.f32.mrb[0].mxu0  ;;  %v367_v4 = vpop.f32.mrb[0].mxu1 }
 0x194   :  { %v325_v5 = vadd.f32 %v324_v3, %v150_v63  ;;  %v3459_v6 = vadd.f32 %v367_v4, %v158_v1  ;;  %v326_v7 = vpop.f32.mrb[1].mxu0  ;;  %v2834_v8 = vpop.f32.mrb[1].mxu1 }
 0x195   :  { %v327_v9 = vadd.f32 %v326_v7, %v154_v2  ;;  %v328_v10 = vpop.f32.mrb[2].mxu0  ;;  %v370_v11 = vpop.f32.mrb[2].mxu1  ;;  %v3520_v8 = vld [vmem:[%s3914_s1 + $0x3] ss:$0 sm:$0xff] }
 0x196   :  { %v374_v12 = vmul.f32 0.25, %v325_v5  ;;  %v666_v13 = vpack.c.bf16 %v3459_v6, %v3459_v6  ;;  %v3463_v14 = vadd.f32 %v370_v11, %v158_v1  ;;  %v330_v15 = vpop.f32.mrb[3].mxu0  ;;  %v2835_v16 = vpop.f32.mrb[3].mxu1  ;;  %v329_v20 = vadd.f32 %v328_v10, %v150_v63  ;;  %v3513_v63 = vld [vmem:[%s3914_s1 + $0x2] ss:$0 sm:$0xff] }
 0x197   :  { %v404_v17 = vpack.c.bf16 %v327_v9, %v327_v9  ;;  %v331_v18 = vadd.f32 %v330_v15, %v154_v2  ;;  %386 = vrot.lane.b32.xlu0 %v327_v9, %s3309_s19 }
 0x198   :  { %v3081_v19 = vpack.i.bf16 %v3463_v14, %v3459_v6  ;;  %v675_v22 = vsel %vm673_vm1, %v666_v13, 0  ;;  %v375_v24 = vmul.f32 0.25, %v329_v20  ;;  %v400_v27 = vpack.c.bf16 %v374_v12, %v374_v12 }
 0x199   :  { %v3076_v21 = vpack.i.bf16 %v331_v18, %v374_v12  ;;  %v437_v23 = vsel %vm432_vm2, %v404_v17, 0  ;;  %2861 = vmatpush3.bf16.msra.mxu0 %v675_v22  ;;  %v405_v25 = vpack.c.bf16 %v331_v18, %v331_v18  ;;  %v667_v40 = vpack.c.bf16 %v3463_v14, %v3463_v14 }
 0x19a   :  { %2837 = vmatpush3.bf16.xpose.msra.mxu1 %v437_v23  ;;  %2872 = vmatprep.subr.bf16.mxu0 %v3306_v0  ;;  %v401_v29 = vpack.c.bf16 %v375_v24, %v375_v24 }
 0x19b   :  { %3077 = vrot.lane.b32.xlu1 %v3076_v21, %s3309_s19  ;;  %2842 = vmatprep.subr.bf16.mxu1 %v3306_v0  ;;  %v483_v28 = vsel %vm432_vm2, %v405_v25, 0  ;;  %v721_v42 = vsel %vm673_vm1, %v667_v40, 0 }
 0x19f   :  { %380 = vrot.lane.b32.xlu1 %v375_v24, %s3309_s19 }
 0x1a1   :  { %2839 = vmatmul.mubr.msk.bf16.vlgmr.msra.gmra.mrb[4].mxu1 %vm432_vm2, %v400_v27 }
 0x1a2   :  { %2843 = vmatpush3.bf16.xpose.msra.mxu1 %v483_v28  ;;  %2844 = vmatprep.mubr.msk.bf16.mxu1 %vm3308_vm0, %v3306_v0 }
 0x1a3   :  { %2848 = vmatprep.subr.bf16.mxu1 %v3306_v0 }
 0x1a9   :  { %2845 = vmatmul.mubr.msk.bf16.vlgmr.msra.gmra.mrb[8].mxu1 %vm432_vm2, %v401_v29 }
 0x1aa   :  { %2850 = vmatprep.mubr.msk.bf16.mxu1 %vm3308_vm0, %v3306_v0 }
 0x209   :  { %v387_v30 = vpop.permute.xlu0 %386 }
 0x20a   :  { %v406_v31 = vpack.c.bf16 %v387_v30, %v387_v30 }
 0x20c   :  { %v529_v32 = vsel %vm432_vm2, %v406_v31, 0 }
 0x20d   :  { %v3078_v33 = vpop.permute.xlu1 %3077  ;;  %2849 = vmatpush3.bf16.xpose.msra.mxu1 %v529_v32 }
 0x20e   :  { %v3080_v34 = vunpack.i.h.bf16 %v3078_v33  ;;  %v3079_v35 = vunpack.i.l.bf16 %v3078_v33  ;;  %2854 = vmatprep.subr.bf16.mxu1 %v3306_v0 }
 0x210   :  { %v407_v36 = vpack.c.bf16 %v3080_v34, %v3080_v34  ;;  %v402_v37 = vpack.c.bf16 %v3079_v35, %v3079_v35 }
 0x211   :  { %v381_v39 = vpop.permute.xlu1 %380 }
 0x212   :  { %v575_v38 = vsel %vm432_vm2, %v407_v36, 0  ;;  %v403_v41 = vpack.c.bf16 %v381_v39, %v381_v39 }
 0x214   :  { %2851 = vmatmul.mubr.msk.bf16.vlgmr.msra.gmra.mrb[12].mxu1 %vm432_vm2, %v402_v37 }
 0x215   :  { %2855 = vmatpush3.bf16.xpose.msra.mxu1 %v575_v38  ;;  %2856 = vmatprep.mubr.msk.bf16.mxu1 %vm3308_vm0, %v3306_v0 }
 0x216   :  { %2866 = vmatprep.subr.bf16.mxu1 %v3306_v0 }
 0x21c   :  { %2857 = vmatmul.mubr.msk.bf16.vlgmr.msra.gmra.mrb[16].mxu1 %vm432_vm2, %v403_v41 }
 0x21d   :  { %2867 = vmatpush3.bf16.msra.mxu1 %v721_v42  ;;  %2868 = vmatprep.mubr.msk.bf16.mxu1 %vm3308_vm0, %v3306_v0 }
 0x21e   :  { %2878 = vmatprep.subr.bf16.mxu1 %v3306_v0 }
 0x274   :  { %v473_v44 = vpop.f32.mrb[4].mxu1 }
 0x275   :  { %v474_v45 = vadd.f32 %v3499_v43, %v473_v44  ;;  %v2840_v46 = vpop.f32.mrb[5].mxu1 }
 0x276   :  { %v476_v47 = vpop.f32.mrb[6].mxu1 }
 0x277   :  { %v2841_v48 = vpop.f32.mrb[7].mxu1  ;;  %v618_v49 = vsel %vm617_vm3, %v474_v45, -inf }
 0x278   :  { %619 = vmax.xlane.f32.xlu1 %v618_v49 }
 0x27c   :  { %v519_v51 = vpop.f32.mrb[8].mxu1 }
 0x27d   :  { %v520_v52 = vadd.f32 %v3506_v50, %v519_v51  ;;  %v2846_v53 = vpop.f32.mrb[9].mxu1 }
 0x27e   :  { %v522_v56 = vpop.f32.mrb[10].mxu1 }
 0x27f   :  { %v2847_v57 = vpop.f32.mrb[11].mxu1  ;;  %v621_v61 = vsel %vm617_vm3, %v520_v52, -inf }
 0x280   :  { %622 = vmax.xlane.f32.xlu0 %v621_v61 }
 0x2e7   :  { %v565_v1 = vpop.f32.mrb[12].mxu1 }
 0x2e8   :  { %v566_v2 = vadd.f32 %v3513_v63, %v565_v1  ;;  %v2852_v3 = vpop.f32.mrb[13].mxu1 }
 0x2e9   :  { %v568_v4 = vpop.f32.mrb[14].mxu1 }
 0x2ea   :  { %v2853_v5 = vpop.f32.mrb[15].mxu1  ;;  %v624_v7 = vsel %vm617_vm3, %v566_v2, -inf  ;;  %v3143_v4 = vld [vmem:[%s3917_s4] sm:$0xff]  }
 0x2eb   :  { %625 = vmax.xlane.f32.xlu0 %v624_v7 }
 0x2ef   :  { %v611_v9 = vpop.f32.mrb[16].mxu1 }
 0x2f0   :  { %v612_v10 = vadd.f32 %v3520_v8, %v611_v9  ;;  %v2858_v11 = vpop.f32.mrb[17].mxu1 }
 0x2f1   :  { %v614_v12 = vpop.f32.mrb[18].mxu1 }
 0x2f2   :  { %v2859_v13 = vpop.f32.mrb[19].mxu1  ;;  %v627_v15 = vsel %vm617_vm3, %v612_v10, -inf }
 0x2f3   :  { %628 = vmax.xlane.f32.xlu0 %v627_v15 }
 0x305   :  { %v620_v16 = vpop.xlane.xlu1 %619 }
 0x306   :  { %v630_v17 = vsub.f32 %v474_v45, %v620_v16  ;;  %v3144_v16 = vld [vmem:[%s3917_s4 + $0x8] sm:$0xff]  }
 0x308   :  { %v634_v18 = vmul.f32 1.442695, %v630_v17 }
 0x30a   :  { %3223 = vpow2.f32 %v634_v18 }
 0x30d   :  { %v623_v20 = vpop.xlane.xlu0 %622 }
 0x30e   :  { %v631_v21 = vsub.f32 %v520_v52, %v623_v20 }
 0x310   :  { %v636_v22 = vmul.f32 1.442695, %v631_v21 }
 0x312   :  { %3225 = vpow2.f32 %v636_v22 }
 0x314   :  { %v3224_v23 = vpop.eup %3223 }
 0x315   :  { %v642_v24 = vsel %vm617_vm3, %v3224_v23, 0.0 }
 0x316   :  { %643 = vadd.xlane.f32.xlu1 %v642_v24 }
 0x31c   :  { %v3226_v25 = vpop.eup %3225 }
 0x31d   :  { %v645_v27 = vsel %vm617_vm3, %v3226_v25, 0.0 }
 0x31e   :  { %646 = vadd.xlane.f32.xlu0 %v645_v27 }
 0x378   :  { %v626_v28 = vpop.xlane.xlu0 %625 }
 0x379   :  { %v632_v29 = vsub.f32 %v566_v2, %v626_v28 }
 0x37b   :  { %v638_v30 = vmul.f32 1.442695, %v632_v29 }
 0x37d   :  { %3227 = vpow2.f32 %v638_v30 }
 0x380   :  { %v629_v31 = vpop.xlane.xlu0 %628 }
 0x381   :  { %v633_v32 = vsub.f32 %v612_v10, %v629_v31 }
 0x383   :  { %v640_v33 = vmul.f32 1.442695, %v633_v32 }
 0x385   :  { %3229 = vpow2.f32 %v640_v33 }
 0x387   :  { %v3228_v34 = vpop.eup %3227 }
 0x388   :  { %v648_v35 = vsel %vm617_vm3, %v3228_v34, 0.0 }
 0x389   :  { %649 = vadd.xlane.f32.xlu1 %v648_v35 }
 0x38f   :  { %v3230_v36 = vpop.eup %3229 }
 0x390   :  { %v651_v37 = vsel %vm617_vm3, %v3230_v36, 0.0 }
 0x391   :  { %652 = vadd.xlane.f32.xlu0 %v651_v37 }
 0x39a   :  { %3082 = vrot.lane.b32.xlu1 %v3081_v19, %s3309_s19 }
 0x3a3   :  { %v644_v38 = vpop.xlane.xlu1 %643 }
 0x3a4   :  { %3231 = vrcp.f32 %v644_v38 }
 0x3ab   :  { %v647_v39 = vpop.xlane.xlu0 %646 }
 0x3ac   :  { %3233 = vrcp.f32 %v647_v39 }
 0x3ae   :  { %v3232_v40 = vpop.eup %3231 }
 0x3af   :  { %v658_v41 = vmul.f32 %v3232_v40, %v3224_v23 }
 0x3b1   :  { %v662_v42 = vpack.c.bf16 %v658_v41, %v658_v41 }
 0x3b3   :  { %2863 = vmatmul.mubr.msk.bf16.vlgmr.msra.gmra.mrb[4].mxu0 %vm617_vm3, %v662_v42 }
 0x3b4   :  { %2874 = vmatprep.mubr.msk.bf16.mxu0 %vm3308_vm0, %v3306_v0 }
 0x3b6   :  { %v3234_v44 = vpop.eup %3233 }
 0x3b7   :  { %v659_v45 = vmul.f32 %v3234_v44, %v3226_v25 }
 0x3b9   :  { %v663_v46 = vpack.c.bf16 %v659_v45, %v659_v45 }
 0x3bb   :  { %2869 = vmatmul.mubr.msk.bf16.vlgmr.msra.gmra.mrb[20].mxu1 %vm617_vm3, %v663_v46  ;;  %v3145_v46 = vld [vmem:[%s3919_s6] sm:$0xff]  }
 0x3bc   :  { %2880 = vmatprep.mubr.msk.bf16.mxu1 %vm3308_vm0, %v3306_v0 }
 0x416   :  { %v650_v6 = vpop.xlane.xlu1 %649 }
 0x417   :  { %3235 = vrcp.f32 %v650_v6  ;;  %v3148_v6 = vld [vmem:[%s3919_s6 + $0x18] sm:$0xff]  }
 0x41a   :  { %v3083_v14 = vpop.permute.xlu1 %3082 }
 0x41b   :  { %v3085_v19 = vunpack.i.h.bf16 %v3083_v14  ;;  %v3084_v47 = vunpack.i.l.bf16 %v3083_v14  ;;  %v3149_v14 = vld [vmem:[%s3919_s6 + $0x20] sm:$0xff]  }
 0x41d   :  { %v669_v48 = vpack.c.bf16 %v3085_v19, %v3085_v19  ;;  %v668_v49 = vpack.c.bf16 %v3084_v47, %v3084_v47  ;;  %v3150_v19 = vld [vmem:[%s3919_s6 + $0x28] sm:$0xff]   ;;  %v3151_v47 = vld [vmem:[%s3919_s6 + $0x30] sm:$0xff]  }
 0x41e   :  { %v653_v51 = vpop.xlane.xlu0 %652 }
 0x41f   :  { %3237 = vrcp.f32 %v653_v51  ;;  %v767_v52 = vsel %vm673_vm1, %v668_v49, 0  ;;  %v813_v53 = vsel %vm673_vm1, %v669_v48, 0  ;;  %v3152_v48 = vld [vmem:[%s3919_s6 + $0x38] sm:$0xff]  }
 0x420   :  { %2873 = vmatpush3.bf16.msra.mxu0 %v767_v52  ;;  %2879 = vmatpush3.bf16.msra.mxu1 %v813_v53 }
 0x421   :  { %v3236_v56 = vpop.eup %3235  ;;  %2884 = vmatprep.subr.bf16.mxu0 %v3306_v0  ;;  %2892 = vmatprep.subr.bf16.mxu1 %v3306_v0 }
 0x422   :  { %v660_v57 = vmul.f32 %v3236_v56, %v3228_v34  ;;  %v2574_v34 = vld [vmem:[%s3918_s5] ss:$0 sm:$0xff] }
 0x424   :  { %v664_v61 = vpack.c.bf16 %v660_v57, %v660_v57 }
 0x426   :  { %2875 = vmatmul.mubr.msk.bf16.vlgmr.msra.gmra.mrb[8].mxu0 %vm617_vm3, %v664_v61 }
 0x427   :  { %2888 = vmatprep.mubr.msk.bf16.mxu0 %vm3308_vm0, %v3306_v0  ;;  %2885 = vmatpush3.bf16.msra.mxu0 %v3143_v4 }
 0x428   :  { %2886 = vmatprep.subr.bf16.mxu0 %v3306_v0 }
 0x429   :  { %v3238_v1 = vpop.eup %3237 }
 0x42a   :  { %v661_v2 = vmul.f32 %v3238_v1, %v3230_v36 }
 0x42b   :  { %2887 = vmatpush3.bf16.msra.mxu0 %v3144_v16 }
 0x42c   :  { %v665_v3 = vpack.c.bf16 %v661_v2, %v661_v2  ;;  %2912 = vmatprep.subr.bf16.mxu0 %v3306_v0 }
 0x42e   :  { %2881 = vmatmul.mubr.msk.bf16.vlgmr.msra.gmra.mrb[24].mxu1 %vm617_vm3, %v665_v3 }
 0x42f   :  { %2908 = vmatprep.mubr.msk.bf16.mxu1 %vm3308_vm0, %v3306_v0  ;;  %2893 = vmatpush3.bf16.msra.mxu1 %v3145_v46 }
 0x430   :  { %2894 = vmatprep.subr.bf16.mxu1 %v3306_v0 }
 0x486   :  { %v711_v5 = vpop.f32.mrb[4].mxu0 }
 0x487   :  { %v2864_v7 = vpop.f32.mrb[5].mxu0 }
 0x488   :  { %v714_v9 = vpop.f32.mrb[6].mxu0 }
 0x489   :  { %v2865_v10 = vpop.f32.mrb[7].mxu0 }
 0x48e   :  { %v757_v11 = vpop.f32.mrb[20].mxu1 }
 0x48f   :  { %v2870_v12 = vpop.f32.mrb[21].mxu1 }
 0x490   :  { %v760_v13 = vpop.f32.mrb[22].mxu1  ;;  %v2580_v12 = vld [vmem:[%s3923_s10 + $0x1] ss:$0 sm:$0xff] }
 0x491   :  { %v2871_v15 = vpop.f32.mrb[23].mxu1 }
 0x4f9   :  { %v803_v17 = vpop.f32.mrb[8].mxu0 }
 0x4fa   :  { %v2876_v18 = vpop.f32.mrb[9].mxu0 }
 0x4fb   :  { %v806_v20 = vpop.f32.mrb[10].mxu0 }
 0x4fc   :  { %v2877_v21 = vpop.f32.mrb[11].mxu0  ;;  %v2581_v20 = vld [vmem:[%s3924_s11 + $0x1] ss:$0 sm:$0xff] }
 0x501   :  { %v849_v22 = vpop.f32.mrb[24].mxu1 }
 0x502   :  { %v3086_v23 = vpack.i.bf16 %v849_v22, %v803_v17  ;;  %v2882_v24 = vpop.f32.mrb[25].mxu1 }
 0x503   :  { %v852_v25 = vpop.f32.mrb[26].mxu1 }
 0x504   :  { %v2883_v27 = vpop.f32.mrb[27].mxu1  ;;  %3087 = vrot.lane.b32.xlu0 %v3086_v23, %s3310_s0  ;;  %v3153_v25 = vld [vmem:[%s3921_s8] sm:$0xff]  }
 0x505   :  { %v3154_v27 = vld [vmem:[%s3921_s8 + $0x8] sm:$0xff]  }
 0x576   :  { %v3088_v28 = vpop.permute.xlu0 %3087 }
 0x577   :  { %v3090_v29 = vunpack.i.h.bf16 %v3088_v28  ;;  %v3089_v30 = vunpack.i.l.bf16 %v3088_v28  ;;  %v3155_v28 = vld [vmem:[%s3921_s8 + $0x10] sm:$0xff]  }
 0x579   :  { %v864_v31 = vsel %vm432_vm2, %v757_v11, %v3090_v29  ;;  %v863_v32 = vsel %vm432_vm2, %v711_v5, %v3089_v30  ;;  %v3157_v29 = vld [vmem:[%s3921_s8 + $0x20] sm:$0xff]   ;;  %v3158_v30 = vld [vmem:[%s3921_s8 + $0x28] sm:$0xff]  }
 0x57a   :  { %v865_v33 = vpack.c.bf16 %v864_v31, %v863_v32  ;;  %v3159_v31 = vld [vmem:[%s3921_s8 + $0x30] sm:$0xff]   ;;  %v3160_v32 = vld [vmem:[%s3921_s8 + $0x38] sm:$0xff]  }
 0x57c   :  { %2889 = vmatmul.mubr.msk.bf16.vlgmr.msra.gmra.mrb[12].mxu0 %vm889_vm4, %v865_v33  ;;  %v2582_v33 = vld [vmem:[%s3920_s7] ss:$0 sm:$0xff] }
 0x57d   :  { %2928 = vmatprep.mubr.msk.bf16.mxu0 %vm3308_vm0, %v3306_v0  ;;  %2913 = vmatpush3.bf16.msra.mxu0 %v3153_v25  ;;  %v3173_v25 = vld [vmem:[#allocation2 + $0x108] ss:$12 sps:$4 sm:$0xff]  }
 0x57e   :  { %2914 = vmatprep.subr.bf16.mxu0 %v3306_v0 }
 0x581   :  { %2915 = vmatpush3.bf16.msra.mxu0 %v3154_v27  ;;  %v3176_v27 = vld [vmem:[#allocation2 + $0x110] ss:$12 sps:$4 sm:$0xff]  }
 0x582   :  { %2916 = vmatprep.subr.bf16.mxu0 %v3306_v0 }
 0x585   :  { %2917 = vmatpush3.bf16.msra.mxu0 %v3155_v28  ;;  %v3179_v28 = vld [vmem:[#allocation2 + $0x124] ss:$12 sps:$4 sm:$0xff]  }
 0x586   :  { %2918 = vmatprep.subr.bf16.mxu0 %v3306_v0 }
 0x64f   :  { %v927_v35 = vpop.f32.mrb[12].mxu0 }
 0x650   :  { %v928_v36 = vadd.f32 %v2574_v34, %v927_v35  ;;  %v2890_v37 = vpop.f32.mrb[13].mxu0 }
 0x651   :  { %v930_v38 = vpop.f32.mrb[14].mxu0 }
 0x652   :  { %v934_v39 = vadd.f32 %v928_v36, %v3435_v54  ;;  %v931_v40 = vadd.f32 %v2574_v34, %v930_v38  ;;  %v2891_v41 = vpop.f32.mrb[15].mxu0  ;;  %v3146_v54 = vld [vmem:[%s3919_s6 + $0x8] sm:$0xff]  }
 0x653   :  { %2895 = vmatpush3.bf16.msra.mxu1 %v3146_v54 }
 0x654   :  { %v935_v42 = vadd.f32 %v931_v40, %v3437_v55  ;;  %940 = vadd.xlane.f32.xlu1 %v934_v39  ;;  %v946_v44 = vmul.f32 %v934_v39, %v934_v39  ;;  %2896 = vmatprep.subr.bf16.mxu1 %v3306_v0  ;;  %v3147_v55 = vld [vmem:[%s3919_s6 + $0x10] sm:$0xff]  }
 0x656   :  { %942 = vadd.xlane.f32.xlu0 %v935_v42  ;;  %v947_v45 = vmul.f32 %v935_v42, %v935_v42 }
 0x657   :  { %2897 = vmatpush3.bf16.msra.mxu1 %v3147_v55 }
 0x658   :  { %948 = vadd.xlane.f32.xlu1 %v946_v44  ;;  %2898 = vmatprep.subr.bf16.mxu1 %v3306_v0 }
 0x65a   :  { %950 = vadd.xlane.f32.xlu0 %v947_v45 }
 0x65b   :  { %2899 = vmatpush3.bf16.msra.mxu1 %v3148_v6 }
 0x65c   :  { %2900 = vmatprep.subr.bf16.mxu1 %v3306_v0 }
 0x65f   :  { %2901 = vmatpush3.bf16.msra.mxu1 %v3149_v14 }
 0x660   :  { %2902 = vmatprep.subr.bf16.mxu1 %v3306_v0 }
 0x663   :  { %2903 = vmatpush3.bf16.msra.mxu1 %v3150_v19 }
 0x664   :  { %2904 = vmatprep.subr.bf16.mxu1 %v3306_v0 }
 0x667   :  { %2905 = vmatpush3.bf16.msra.mxu1 %v3151_v47 }
 0x668   :  { %2906 = vmatprep.subr.bf16.mxu1 %v3306_v0 }
 0x66b   :  { %2907 = vmatpush3.bf16.msra.mxu1 %v3152_v48 }
 0x6e1   :  { %v941_v49 = vpop.xlane.xlu1 %940 }
 0x6e2   :  { %v944_v51 = vmul.f32 0.03125, %v941_v49 }
 0x6e3   :  { %v943_v52 = vpop.xlane.xlu0 %942 }
 0x6e4   :  { %v945_v53 = vmul.f32 0.03125, %v943_v52  ;;  %v954_v57 = vmul.f32 %v944_v51, %v944_v51  ;;  %v958_v10 = vsub.f32 %v934_v39, %v944_v51 }
 0x6e5   :  { %v949_v56 = vpop.xlane.xlu1 %948 }
 0x6e6   :  { %v952_v61 = vmul.f32 0.03125, %v949_v56  ;;  %v955_v2 = vmul.f32 %v945_v53, %v945_v53  ;;  %v959_v13 = vsub.f32 %v935_v42, %v945_v53 }
 0x6e7   :  { %v951_v1 = vpop.xlane.xlu0 %950 }
 0x6e8   :  { %v956_v3 = vsub.f32 %v952_v61, %v954_v57  ;;  %v953_v4 = vmul.f32 0.03125, %v951_v1  ;;  %v3161_v61 = vld [vmem:[#allocation2 + $0xc0] ss:$12 sps:$4 sm:$0xff]   ;;  %v3163_v1 = vld [vmem:[#allocation2 + $0xc4] ss:$12 sps:$4 sm:$0xff]  }
 0x6e9   :  { %1454 = vmatprep.subr.bf16.mxu1 %v3163_v1 }
 0x6ea   :  { %v960_v5 = vadd.f32 1e-12, %v956_v3  ;;  %v957_v7 = vsub.f32 %v953_v4, %v955_v2  ;;  %v2591_v2 = vld [vmem:[%s3922_s9] ss:$0 sm:$0xff] }
 0x6ec   :  { %3239 = vrsqrt.f32 %v960_v5  ;;  %v961_v9 = vadd.f32 1e-12, %v957_v7 }
 0x6ee   :  { %3241 = vrsqrt.f32 %v961_v9 }
 0x6f6   :  { %v3240_v11 = vpop.eup %3239 }
 0x6f7   :  { %v964_v15 = vmul.f32 %v3240_v11, %v958_v10 }
 0x6f8   :  { %v3242_v16 = vpop.eup %3241 }
 0x6f9   :  { %v965_v17 = vmul.f32 %v3242_v16, %v959_v13  ;;  %v972_v18 = vmul.f32 %v2580_v12, %v964_v15  ;;  %v3164_v16 = vld [vmem:[#allocation2 + $0xc8] ss:$12 sps:$4 sm:$0xff]  }
 0x6fb   :  { %v973_v21 = vmul.f32 %v2580_v12, %v965_v17  ;;  %v3604_v22 = vadd.f32 %v2581_v20, %v972_v18  ;;  %v3167_v17 = vld [vmem:[#allocation2 + $0xdc] ss:$12 sps:$4 sm:$0xff]   ;;  %v3165_v18 = vld [vmem:[#allocation2 + $0xd8] ss:$12 sps:$4 sm:$0xff]  }
 0x6fd   :  { %v3606_v23 = vadd.f32 %v2581_v20, %v973_v21  ;;  %v3168_v20 = vld [vmem:[#allocation2 + $0xe0] ss:$12 sps:$4 sm:$0xff]  }
 0x6fe   :  { %v3171_v21 = vld [vmem:[#allocation2 + $0xf4] ss:$12 sps:$4 sm:$0xff]  }
 0x6ff   :  { %v982_v24 = vpack.c.bf16 %v3606_v23, %v3604_v22 }
 0x701   :  { %2909 = vmatmul.mubr.bf16.vlgmr.msra.gmra.mrb[28].mxu1 %v982_v24  ;;  %v3175_v24 = vld [vmem:[#allocation2 + $0x10c] ss:$12 sps:$4 sm:$0xff]  }
 0x702   :  { %1486 = vmatprep.mubr.bf16.mxu1 %v3307_v26  ;;  %v3156_v26 = vld [vmem:[%s3921_s8 + $0x18] sm:$0xff]   ;;  %1455 = vmatpush1.bf16.msra.mxu1 %v3161_v61 }
 0x703   :  { %2919 = vmatpush3.bf16.msra.mxu0 %v3156_v26  ;;  %1456 = vmatprep.subr.bf16.mxu1 %v3167_v17  ;;  %v3177_v26 = vld [vmem:[#allocation2 + $0x120] ss:$12 sps:$4 sm:$0xff]  }
 0x704   :  { %2920 = vmatprep.subr.bf16.mxu0 %v3306_v0 }
 0x706   :  { %1457 = vmatpush1.bf16.msra.mxu1 %v3165_v18 }
 0x707   :  { %2921 = vmatpush3.bf16.msra.mxu0 %v3157_v29  ;;  %1458 = vmatprep.subr.bf16.mxu1 %v3171_v21  ;;  %v3180_v29 = vld [vmem:[#allocation2 + $0x128] ss:$12 sps:$4 sm:$0xff]  }
 0x708   :  { %2922 = vmatprep.subr.bf16.mxu0 %v3306_v0 }
 0x70b   :  { %2923 = vmatpush3.bf16.msra.mxu0 %v3158_v30  ;;  %v3183_v30 = vld [vmem:[#allocation2 + $0x13c] ss:$12 sps:$4 sm:$0xff]  }
 0x70c   :  { %2924 = vmatprep.subr.bf16.mxu0 %v3306_v0 }
 0x70f   :  { %2925 = vmatpush3.bf16.msra.mxu0 %v3159_v31  ;;  %v3181_v31 = vld [vmem:[#allocation2 + $0x138] ss:$12 sps:$4 sm:$0xff]  }
 0x710   :  { %2926 = vmatprep.subr.bf16.mxu0 %v3306_v0 }
 0x713   :  { %2927 = vmatpush3.bf16.msra.mxu0 %v3160_v32  ;;  %v3184_v32 = vld [vmem:[#allocation2 + $0x140] ss:$12 sps:$4 sm:$0xff]  }
 0x714   :  { %2932 = vmatprep.subr.bf16.mxu0 %v3306_v0 }
 0x7d4   :  { %v1088_v34 = vpop.f32.mrb[28].mxu1 }
 0x7d5   :  { %v1089_v35 = vadd.f32 %v2582_v33, %v1088_v34  ;;  %v2910_v36 = vpop.f32.mrb[29].mxu1  ;;  %v3185_v34 = vld [vmem:[#allocation2 + $0x150] ss:$12 sps:$4 sm:$0xff]  }
 0x7d6   :  { %v1091_v37 = vpop.f32.mrb[30].mxu1  ;;  %v3191_v36 = vld [vmem:[#allocation2 + $0x16c] ss:$12 sps:$4 sm:$0xff]  }
 0x7d7   :  { %v1097_v38 = vmul.f32 0.044715, %v1089_v35  ;;  %v1092_v39 = vadd.f32 %v2582_v33, %v1091_v37  ;;  %v2911_v40 = vpop.f32.mrb[31].mxu1  ;;  %v1095_v49 = vmul.f32 0.5, %v1089_v35  ;;  %v3187_v33 = vld [vmem:[#allocation2 + $0x154] ss:$12 sps:$4 sm:$0xff]  }
 0x7d8   :  { %v3189_v37 = vld [vmem:[#allocation2 + $0x168] ss:$12 sps:$4 sm:$0xff]  }
 0x7d9   :  { %v1099_v41 = vmul.f32 %v1097_v38, %v1089_v35  ;;  %v1098_v42 = vmul.f32 0.044715, %v1092_v39  ;;  %v1096_v51 = vmul.f32 0.5, %v1092_v39  ;;  %v3192_v38 = vld [vmem:[#allocation2 + $0x170] ss:$12 sps:$4 sm:$0xff]  }
 0x7db   :  { %v1101_v44 = vmul.f32 %v1099_v41, %v1089_v35  ;;  %v1100_v45 = vmul.f32 %v1098_v42, %v1092_v39 }
 0x7dd   :  { %v1103_v46 = vadd.f32 %v1101_v44, %v1089_v35  ;;  %v1102_v54 = vmul.f32 %v1100_v45, %v1092_v39  ;;  %v3188_v35 = vld [vmem:[#allocation2 + $0x158] ss:$12 sps:$4 sm:$0xff]  }
 0x7df   :  { %v1105_v55 = vmul.f32 0.7978846, %v1103_v46  ;;  %v1104_v6 = vadd.f32 %v1102_v54, %v1092_v39 }
 0x7e1   :  { %3243 = vtanh.f32 %v1105_v55  ;;  %v1106_v14 = vmul.f32 0.7978846, %v1104_v6 }
 0x7e3   :  { %3245 = vtanh.f32 %v1106_v14 }
 0x7eb   :  { %v3244_v19 = vpop.eup %3243 }
 0x7ec   :  { %v1109_v47 = vadd.f32 1.0, %v3244_v19 }
 0x7ed   :  { %v3246_v48 = vpop.eup %3245 }
 0x7ee   :  { %v1110_v52 = vadd.f32 1.0, %v3246_v48  ;;  %v1111_v53 = vmul.f32 %v1109_v47, %v1095_v49 }
 0x7f0   :  { %v1112_v56 = vmul.f32 %v1110_v52, %v1096_v51  ;;  %v2602_v52 = vld [vmem:[%s3923_s10 + $0x2] ss:$0 sm:$0xff] }
 0x7f2   :  { %v1113_v57 = vpack.c.bf16 %v1112_v56, %v1111_v53 }
 0x7f4   :  { %2929 = vmatmul.mubr.bf16.vlgmr.msra.gmra.mrb[16].mxu0 %v1113_v57 }
 0x7f5   :  { %2948 = vmatprep.mubr.msk.bf16.mxu0 %vm3308_vm0, %v3306_v0  ;;  %2933 = vmatpush3.bf16.msra.mxu0 %v3164_v16 }
 0x7f6   :  { %2934 = vmatprep.subr.bf16.mxu0 %v3306_v0 }
 0x7f9   :  { %2935 = vmatpush3.bf16.msra.mxu0 %v3168_v20 }
 0x7fa   :  { %2936 = vmatprep.subr.bf16.mxu0 %v3306_v0 }
 0x8c7   :  { %v1219_v3 = vpop.f32.mrb[16].mxu0 }
 0x8c8   :  { %v1220_v4 = vadd.f32 %v2591_v2, %v1219_v3  ;;  %v2930_v5 = vpop.f32.mrb[17].mxu0 }
 0x8c9   :  { %v1222_v7 = vpop.f32.mrb[18].mxu0 }
 0x8ca   :  { %v3652_v9 = vadd.f32 %v1220_v4, %v3604_v22  ;;  %v1223_v10 = vadd.f32 %v2591_v2, %v1222_v7  ;;  %v2931_v11 = vpop.f32.mrb[19].mxu0  ;;  %v3169_v22 = vld [vmem:[#allocation2 + $0xf0] ss:$12 sps:$4 sm:$0xff]   ;;  %v2603_v2 = vld [vmem:[%s3924_s11 + $0x2] ss:$0 sm:$0xff] }
 0x8cb   :  { %1459 = vmatpush1.bf16.msra.mxu1 %v3169_v22 }
 0x8cc   :  { %v3655_v12 = vadd.f32 %v1223_v10, %v3606_v23  ;;  %1232 = vadd.xlane.f32.xlu1 %v3652_v9  ;;  %v1238_v13 = vmul.f32 %v3652_v9, %v3652_v9  ;;  %v3172_v23 = vld [vmem:[#allocation2 + $0xf8] ss:$12 sps:$4 sm:$0xff]   ;;  %1460 = vmatprep.subr.bf16.mxu1 %v3175_v24 }
 0x8cd   :  { %2937 = vmatpush3.bf16.msra.mxu0 %v3172_v23 }
 0x8ce   :  { %1234 = vadd.xlane.f32.xlu0 %v3655_v12  ;;  %v1239_v15 = vmul.f32 %v3655_v12, %v3655_v12  ;;  %2938 = vmatprep.subr.bf16.mxu0 %v3306_v0 }
 0x8cf   :  { %1461 = vmatpush1.bf16.msra.mxu1 %v3173_v25 }
 0x8d0   :  { %1240 = vadd.xlane.f32.xlu1 %v1238_v13  ;;  %1462 = vmatprep.subr.bf16.mxu1 %v3179_v28 }
 0x8d1   :  { %2939 = vmatpush3.bf16.msra.mxu0 %v3176_v27 }
 0x8d2   :  { %1242 = vadd.xlane.f32.xlu0 %v1239_v15  ;;  %2940 = vmatprep.subr.bf16.mxu0 %v3306_v0 }
 0x8d3   :  { %1463 = vmatpush1.bf16.msra.mxu1 %v3177_v26 }
 0x8d4   :  { %1464 = vmatprep.subr.bf16.mxu1 %v3183_v30 }
 0x8d5   :  { %2941 = vmatpush3.bf16.msra.mxu0 %v3180_v29 }
 0x8d6   :  { %2942 = vmatprep.subr.bf16.mxu0 %v3306_v0 }
 0x8d7   :  { %1465 = vmatpush1.bf16.msra.mxu1 %v3181_v31 }
 0x8d8   :  { %1466 = vmatprep.subr.bf16.mxu1 %v3187_v33 }
 0x8d9   :  { %2943 = vmatpush3.bf16.msra.mxu0 %v3184_v32 }
 0x8da   :  { %2944 = vmatprep.subr.bf16.mxu0 %v3306_v0 }
 0x8db   :  { %1467 = vmatpush1.bf16.msra.mxu1 %v3185_v34 }
 0x8dc   :  { %1468 = vmatprep.subr.bf16.mxu1 %v3191_v36 }
 0x8dd   :  { %2945 = vmatpush3.bf16.msra.mxu0 %v3188_v35 }
 0x8de   :  { %2946 = vmatprep.subr.bf16.mxu0 %v3306_v0 }
 0x8df   :  { %1469 = vmatpush1.bf16.msra.mxu1 %v3189_v37 }
 0x8e0   :  { %2952 = vmatprep.subr.bf16.mxu1 %v3306_v0 }
 0x8e1   :  { %2947 = vmatpush3.bf16.msra.mxu0 %v3192_v38 }
 0x8e2   :  { %2958 = vmatprep.subr.bf16.mxu0 %v3306_v0 }
 0x959   :  { %v1233_v39 = vpop.xlane.xlu1 %1232 }
 0x95a   :  { %v1236_v40 = vmul.f32 0.03125, %v1233_v39 }
 0x95b   :  { %v1235_v41 = vpop.xlane.xlu0 %1234 }
 0x95c   :  { %v1237_v42 = vmul.f32 0.03125, %v1235_v41  ;;  %v1246_v45 = vmul.f32 %v1236_v40, %v1236_v40  ;;  %v1250_v49 = vsub.f32 %v3652_v9, %v1236_v40  ;;  %v2604_v9 = vld [vmem:[%s3916_s3 + $0x3] sm:$0x7] }
 0x95d   :  { %v1241_v44 = vpop.xlane.xlu1 %1240  ;;  %v1314_v10 = vrot.slane %v2604_v9, %v149_v59  ;;  %v1318_v11 = vrot.slane %v2604_v9, %v153_v62 }
 0x95e   :  { %v1244_v46 = vmul.f32 0.03125, %v1241_v44  ;;  %v1247_v55 = vmul.f32 %v1237_v42, %v1237_v42  ;;  %v1251_v53 = vsub.f32 %v3655_v12, %v1237_v42  ;;  %v1322_v12 = vrot.slane %v2604_v9, %v157_v60 }
 0x95f   :  { %v1243_v54 = vpop.xlane.xlu0 %1242 }
 0x960   :  { %v1248_v6 = vsub.f32 %v1244_v46, %v1246_v45  ;;  %v1245_v14 = vmul.f32 0.03125, %v1243_v54 }
 0x962   :  { %v1252_v19 = vadd.f32 1e-12, %v1248_v6  ;;  %v1249_v47 = vsub.f32 %v1245_v14, %v1247_v55 }
 0x964   :  { %3247 = vrsqrt.f32 %v1252_v19  ;;  %v1253_v48 = vadd.f32 1e-12, %v1249_v47 }
 0x966   :  { %3249 = vrsqrt.f32 %v1253_v48 }
 0x96e   :  { %v3248_v51 = vpop.eup %3247 }
 0x96f   :  { %v1256_v56 = vmul.f32 %v3248_v51, %v1250_v49 }
 0x970   :  { %v3250_v57 = vpop.eup %3249 }
 0x971   :  { %v1257_v61 = vmul.f32 %v3250_v57, %v1251_v53  ;;  %v1264_v1 = vmul.f32 %v2602_v52, %v1256_v56 }
 0x973   :  { %v1265_v3 = vmul.f32 %v2602_v52, %v1257_v61  ;;  %v3680_v4 = vadd.f32 %v2603_v2, %v1264_v1 }
 0x975   :  { %v3682_v5 = vadd.f32 %v2603_v2, %v1265_v3 }
 0x977   :  { %v1274_v7 = vpack.c.bf16 %v3682_v5, %v3680_v4 }
 0x979   :  { %1487 = vmatmul.mubr.bf16.vlgmr.msra.gmra.mrb[32].mxu1 %v1274_v7  ;;  %2949 = vmatmul.mubr.bf16.vlgmr.msra.gmra.mrb[20].mxu0 %v1274_v7 }
 0x97a   :  { %2954 = vmatprep.mubr.msk.bf16.mxu1 %vm3308_vm0, %v3306_v0  ;;  %2960 = vmatprep.mubr.msk.bf16.mxu0 %vm3308_vm0, %v3306_v0 }
 0xa4c   :  { %v1488_v13 = vpop.f32.mrb[32].mxu1  ;;  %v1531_v15 = vpop.f32.mrb[20].mxu0 }
 0xa4d   :  { %v1489_v16 = vadd.f32 %v1488_v13, %v1314_v10  ;;  %v1490_v17 = vpop.f32.mrb[33].mxu1  ;;  %v2950_v18 = vpop.f32.mrb[21].mxu0  ;;  %v3699_v23 = vadd.f32 %v1531_v15, %v1322_v12 }
 0xa4e   :  { %v1491_v20 = vadd.f32 %v1490_v17, %v1318_v11  ;;  %v1492_v21 = vpop.f32.mrb[34].mxu1  ;;  %v1534_v22 = vpop.f32.mrb[22].mxu0 }
 0xa4f   :  { %v1493_v24 = vadd.f32 %v1492_v21, %v1314_v10  ;;  %v3701_v25 = vadd.f32 %v1534_v22, %v1322_v12  ;;  %v1494_v59 = vpop.f32.mrb[35].mxu1  ;;  %v2951_v27 = vpop.f32.mrb[23].mxu0  ;;  %v1538_v26 = vmul.f32 0.25, %v1489_v16  ;;  %v1804_v54 = vpack.c.bf16 %v3699_v23, %v3699_v23 }
 0xa50   :  { %v1568_v28 = vpack.c.bf16 %v1491_v20, %v1491_v20  ;;  %v1495_v62 = vadd.f32 %v1494_v59, %v1318_v11 }
 0xa51   :  { %v1539_v58 = vmul.f32 0.25, %v1493_v24  ;;  %v3101_v60 = vpack.i.bf16 %v3701_v25, %v3699_v23  ;;  %v1564_v34 = vpack.c.bf16 %v1538_v26, %v1538_v26  ;;  %v1805_v55 = vpack.c.bf16 %v3701_v25, %v3701_v25 }
 0xa52   :  { %v1569_v29 = vpack.c.bf16 %v1495_v62, %v1495_v62  ;;  %v3091_v30 = vpack.i.bf16 %v1495_v62, %v1491_v20  ;;  %v1576_v31 = vsel %vm432_vm2, %v1568_v28, 0  ;;  %v1812_v19 = vsel %vm673_vm1, %v1804_v54, 0 }
 0xa53   :  { %v3096_v32 = vpack.i.bf16 %v1539_v58, %v1538_v26  ;;  %2953 = vmatpush3.bf16.xpose.msra.mxu1 %v1576_v31  ;;  %v1565_v35 = vpack.c.bf16 %v1539_v58, %v1539_v58  ;;  %v1858_v47 = vsel %vm673_vm1, %v1805_v55, 0 }
 0xa54   :  { %3092 = vrot.lane.b32.xlu1 %v3091_v30, %s3309_s19  ;;  %v1622_v33 = vsel %vm432_vm2, %v1569_v29, 0  ;;  %2964 = vmatprep.subr.bf16.mxu1 %v3306_v0 }
 0xa55   :  { %2959 = vmatpush3.bf16.xpose.msra.mxu0 %v1622_v33  ;;  %3097 = vrot.lane.b32.xlu0 %v3096_v32, %s3309_s19 }
 0xa56   :  { %2970 = vmatprep.subr.bf16.mxu0 %v3306_v0 }
 0xa5a   :  { %2955 = vmatmul.mubr.msk.bf16.vlgmr.msra.gmra.mrb[36].mxu1 %vm432_vm2, %v1564_v34 }
 0xa5b   :  { %2966 = vmatprep.mubr.msk.bf16.mxu1 %vm3308_vm0, %v3306_v0 }
 0xa5c   :  { %2961 = vmatmul.mubr.msk.bf16.vlgmr.msra.gmra.mrb[24].mxu0 %vm432_vm2, %v1565_v35 }
 0xa5d   :  { %2972 = vmatprep.mubr.msk.bf16.mxu0 %vm3308_vm0, %v3306_v0 }
 0xac6   :  { %v3093_v36 = vpop.permute.xlu1 %3092 }
 0xac7   :  { %v3095_v37 = vunpack.i.h.bf16 %v3093_v36  ;;  %v3094_v38 = vunpack.i.l.bf16 %v3093_v36  ;;  %v3098_v41 = vpop.permute.xlu0 %3097 }
 0xac8   :  { %v3100_v45 = vunpack.i.h.bf16 %v3098_v41  ;;  %v3099_v46 = vunpack.i.l.bf16 %v3098_v41 }
 0xac9   :  { %v1571_v39 = vpack.c.bf16 %v3095_v37, %v3095_v37  ;;  %v1570_v40 = vpack.c.bf16 %v3094_v38, %v3094_v38 }
 0xaca   :  { %v1567_v6 = vpack.c.bf16 %v3100_v45, %v3100_v45  ;;  %v1566_v14 = vpack.c.bf16 %v3099_v46, %v3099_v46 }
 0xacb   :  { %v1668_v42 = vsel %vm432_vm2, %v1570_v40, 0  ;;  %v1714_v44 = vsel %vm432_vm2, %v1571_v39, 0 }
 0xacc   :  { %2965 = vmatpush3.bf16.xpose.msra.mxu1 %v1668_v42  ;;  %2971 = vmatpush3.bf16.xpose.msra.mxu0 %v1714_v44 }
 0xacd   :  { %2976 = vmatprep.subr.bf16.mxu1 %v3306_v0  ;;  %2982 = vmatprep.subr.bf16.mxu0 %v3306_v0 }
 0xad3   :  { %2967 = vmatmul.mubr.msk.bf16.vlgmr.msra.gmra.mrb[40].mxu1 %vm432_vm2, %v1566_v14  ;;  %2973 = vmatmul.mubr.msk.bf16.vlgmr.msra.gmra.mrb[28].mxu0 %vm432_vm2, %v1567_v6 }
 0xad4   :  { %2977 = vmatpush3.bf16.msra.mxu1 %v1812_v19  ;;  %2983 = vmatpush3.bf16.msra.mxu0 %v1858_v47 }
 0xad5   :  { %2978 = vmatprep.mubr.msk.bf16.mxu1 %vm3308_vm0, %v3306_v0  ;;  %2984 = vmatprep.mubr.msk.bf16.mxu0 %vm3308_vm0, %v3306_v0 }
 0xad6   :  { %2988 = vmatprep.subr.bf16.mxu1 %v3306_v0  ;;  %2994 = vmatprep.subr.bf16.mxu0 %v3306_v0 }
 0xb2d   :  { %v1612_v48 = vpop.f32.mrb[36].mxu1 }
 0xb2e   :  { %v1613_v49 = vadd.f32 %v3499_v43, %v1612_v48  ;;  %v2956_v51 = vpop.f32.mrb[37].mxu1 }
 0xb2f   :  { %v1615_v52 = vpop.f32.mrb[38].mxu1  ;;  %v1658_v53 = vpop.f32.mrb[24].mxu0 }
 0xb30   :  { %v1659_v56 = vadd.f32 %v3506_v50, %v1658_v53  ;;  %v2957_v57 = vpop.f32.mrb[39].mxu1  ;;  %v2962_v61 = vpop.f32.mrb[25].mxu0  ;;  %v1756_v1 = vsel %vm617_vm3, %v1613_v49, -inf }
 0xb31   :  { %1757 = vmax.xlane.f32.xlu1 %v1756_v1  ;;  %v1661_v2 = vpop.f32.mrb[26].mxu0  ;;  %v3193_v57 = vld [vmem:[%s3917_s4 + $0x10] sm:$0xff]  }
 0xb32   :  { %v2963_v3 = vpop.f32.mrb[27].mxu0  ;;  %v1759_v7 = vsel %vm617_vm3, %v1659_v56, -inf }
 0xb33   :  { %1760 = vmax.xlane.f32.xlu0 %v1759_v7 }
 0xba6   :  { %v1704_v9 = vpop.f32.mrb[40].mxu1  ;;  %v1750_v10 = vpop.f32.mrb[28].mxu0 }
 0xba7   :  { %v1705_v11 = vadd.f32 %v3513_v63, %v1704_v9  ;;  %v1751_v43 = vadd.f32 %v3520_v8, %v1750_v10  ;;  %v2968_v12 = vpop.f32.mrb[41].mxu1  ;;  %v2974_v13 = vpop.f32.mrb[29].mxu0 }
 0xba8   :  { %v1707_v15 = vpop.f32.mrb[42].mxu1  ;;  %v1753_v50 = vpop.f32.mrb[30].mxu0 }
 0xba9   :  { %v2969_v16 = vpop.f32.mrb[43].mxu1  ;;  %v2975_v17 = vpop.f32.mrb[31].mxu0  ;;  %v1762_v18 = vsel %vm617_vm3, %v1705_v11, -inf  ;;  %v1765_v20 = vsel %vm617_vm3, %v1751_v43, -inf }
 0xbaa   :  { %1763 = vmax.xlane.f32.xlu1 %v1762_v18  ;;  %1766 = vmax.xlane.f32.xlu0 %v1765_v20 }
 0xbbe   :  { %v1758_v21 = vpop.xlane.xlu1 %1757 }
 0xbbf   :  { %v1768_v22 = vsub.f32 %v1613_v49, %v1758_v21 }
 0xbc0   :  { %v1761_v24 = vpop.xlane.xlu0 %1760 }
 0xbc1   :  { %v1772_v59 = vmul.f32 1.442695, %v1768_v22  ;;  %v1769_v27 = vsub.f32 %v1659_v56, %v1761_v24 }
 0xbc3   :  { %3251 = vpow2.f32 %v1772_v59  ;;  %v1774_v63 = vmul.f32 1.442695, %v1769_v27 }
 0xbc5   :  { %3253 = vpow2.f32 %v1774_v63 }
 0xbcd   :  { %v3252_v8 = vpop.eup %3251 }
 0xbce   :  { %v1780_v28 = vsel %vm617_vm3, %v3252_v8, 0.0 }
 0xbcf   :  { %v3254_v62 = vpop.eup %3253  ;;  %1781 = vadd.xlane.f32.xlu1 %v1780_v28  ;;  %v2642_v28 = vld [vmem:[%s3918_s5 + $0x1] ss:$0 sm:$0xff] }
 0xbd0   :  { %v1783_v26 = vsel %vm617_vm3, %v3254_v62, 0.0 }
 0xbd1   :  { %1784 = vadd.xlane.f32.xlu0 %v1783_v26 }
 0xc37   :  { %v1764_v58 = vpop.xlane.xlu1 %1763  ;;  %v1767_v29 = vpop.xlane.xlu0 %1766 }
 0xc38   :  { %v1770_v30 = vsub.f32 %v1705_v11, %v1764_v58  ;;  %v1771_v31 = vsub.f32 %v1751_v43, %v1767_v29  ;;  %v3194_v43 = vld [vmem:[%s3917_s4 + $0x18] sm:$0xff]  }
 0xc3a   :  { %v1776_v32 = vmul.f32 1.442695, %v1770_v30  ;;  %v1778_v33 = vmul.f32 1.442695, %v1771_v31 }
 0xc3c   :  { %3255 = vpow2.f32 %v1776_v32 }
 0xc3d   :  { %3257 = vpow2.f32 %v1778_v33 }
 0xc46   :  { %v3256_v34 = vpop.eup %3255 }
 0xc47   :  { %v3258_v35 = vpop.eup %3257  ;;  %v1786_v36 = vsel %vm617_vm3, %v3256_v34, 0.0 }
 0xc48   :  { %1787 = vadd.xlane.f32.xlu1 %v1786_v36  ;;  %v1789_v37 = vsel %vm617_vm3, %v3258_v35, 0.0  ;;  %v3195_v36 = vld [vmem:[%s3919_s6 + $0x40] sm:$0xff]  }
 0xc49   :  { %1790 = vadd.xlane.f32.xlu0 %v1789_v37  ;;  %v3198_v37 = vld [vmem:[%s3919_s6 + $0x58] sm:$0xff]  }
 0xc59   :  { %3102 = vrot.lane.b32.xlu1 %v3101_v60, %s3309_s19 }
 0xc5c   :  { %v1782_v38 = vpop.xlane.xlu1 %1781 }
 0xc5d   :  { %3259 = vrcp.f32 %v1782_v38  ;;  %v3199_v38 = vld [vmem:[%s3919_s6 + $0x60] sm:$0xff]  }
 0xc5e   :  { %v1785_v39 = vpop.xlane.xlu0 %1784 }
 0xc5f   :  { %3261 = vrcp.f32 %v1785_v39  ;;  %v3200_v39 = vld [vmem:[%s3919_s6 + $0x68] sm:$0xff]  }
 0xc67   :  { %v3260_v40 = vpop.eup %3259 }
 0xc68   :  { %v1796_v41 = vmul.f32 %v3260_v40, %v3252_v8  ;;  %v3201_v40 = vld [vmem:[%s3919_s6 + $0x70] sm:$0xff]  }
 0xc69   :  { %v3262_v42 = vpop.eup %3261 }
 0xc6a   :  { %v1797_v44 = vmul.f32 %v3262_v42, %v3254_v62  ;;  %v1800_v45 = vpack.c.bf16 %v1796_v41, %v1796_v41  ;;  %v3202_v41 = vld [vmem:[%s3919_s6 + $0x78] sm:$0xff]  }
 0xc6c   :  { %2979 = vmatmul.mubr.msk.bf16.vlgmr.msra.gmra.mrb[44].mxu1 %vm617_vm3, %v1800_v45  ;;  %v1801_v46 = vpack.c.bf16 %v1797_v44, %v1797_v44 }
 0xc6d   :  { %2990 = vmatprep.mubr.msk.bf16.mxu1 %vm3308_vm0, %v3306_v0 }
 0xc6e   :  { %2985 = vmatmul.mubr.msk.bf16.vlgmr.msra.gmra.mrb[32].mxu0 %vm617_vm3, %v1801_v46 }
 0xc6f   :  { %2996 = vmatprep.mubr.msk.bf16.mxu0 %vm3308_vm0, %v3306_v0 }
 0xcd5   :  { %v1788_v23 = vpop.xlane.xlu1 %1787 }
 0xcd6   :  { %3263 = vrcp.f32 %v1788_v23  ;;  %v1791_v25 = vpop.xlane.xlu0 %1790 }
 0xcd7   :  { %3265 = vrcp.f32 %v1791_v25 }
 0xcd9   :  { %v3103_v60 = vpop.permute.xlu1 %3102 }
 0xcda   :  { %v3105_v54 = vunpack.i.h.bf16 %v3103_v60  ;;  %v3104_v55 = vunpack.i.l.bf16 %v3103_v60 }
 0xcdc   :  { %v1807_v6 = vpack.c.bf16 %v3105_v54, %v3105_v54  ;;  %v1806_v14 = vpack.c.bf16 %v3104_v55, %v3104_v55 }
 0xcde   :  { %v1904_v19 = vsel %vm673_vm1, %v1806_v14, 0  ;;  %v1950_v47 = vsel %vm673_vm1, %v1807_v6, 0 }
 0xcdf   :  { %2989 = vmatpush3.bf16.msra.mxu1 %v1904_v19  ;;  %2995 = vmatpush3.bf16.msra.mxu0 %v1950_v47 }
 0xce0   :  { %v3264_v48 = vpop.eup %3263  ;;  %3000 = vmatprep.subr.bf16.mxu1 %v3306_v0  ;;  %3008 = vmatprep.subr.bf16.mxu0 %v3306_v0 }
 0xce1   :  { %v3266_v49 = vpop.eup %3265  ;;  %v1798_v51 = vmul.f32 %v3264_v48, %v3256_v34 }
 0xce2   :  { %v1799_v52 = vmul.f32 %v3266_v49, %v3258_v35 }
 0xce3   :  { %v1802_v53 = vpack.c.bf16 %v1798_v51, %v1798_v51 }
 0xce4   :  { %v1803_v56 = vpack.c.bf16 %v1799_v52, %v1799_v52  ;;  %v2648_v52 = vld [vmem:[%s3923_s10 + $0x3] ss:$0 sm:$0xff] }
 0xce5   :  { %2991 = vmatmul.mubr.msk.bf16.vlgmr.msra.gmra.mrb[48].mxu1 %vm617_vm3, %v1802_v53 }
 0xce6   :  { %2997 = vmatmul.mubr.msk.bf16.vlgmr.msra.gmra.mrb[36].mxu0 %vm617_vm3, %v1803_v56  ;;  %3004 = vmatprep.mubr.msk.bf16.mxu1 %vm3308_vm0, %v3306_v0 }
 0xce7   :  { %3024 = vmatprep.mubr.msk.bf16.mxu0 %vm3308_vm0, %v3306_v0  ;;  %3001 = vmatpush3.bf16.msra.mxu1 %v3193_v57 }
 0xce8   :  { %3002 = vmatprep.subr.bf16.mxu1 %v3306_v0  ;;  %3009 = vmatpush3.bf16.msra.mxu0 %v3195_v36 }
 0xce9   :  { %3010 = vmatprep.subr.bf16.mxu0 %v3306_v0 }
 0xceb   :  { %3003 = vmatpush3.bf16.msra.mxu1 %v3194_v43  ;;  %v3204_v43 = vld [vmem:[%s3921_s8 + $0x48] sm:$0xff]  }
 0xcec   :  { %3028 = vmatprep.subr.bf16.mxu1 %v3306_v0 }
 0xd3f   :  { %v1848_v61 = vpop.f32.mrb[44].mxu1 }
 0xd40   :  { %v2980_v1 = vpop.f32.mrb[45].mxu1 }
 0xd41   :  { %v1851_v2 = vpop.f32.mrb[46].mxu1  ;;  %v1894_v3 = vpop.f32.mrb[32].mxu0 }
 0xd42   :  { %v2981_v7 = vpop.f32.mrb[47].mxu1  ;;  %v2986_v9 = vpop.f32.mrb[33].mxu0  ;;  %v2649_v2 = vld [vmem:[%s3924_s11 + $0x3] ss:$0 sm:$0xff] }
 0xd43   :  { %v1897_v10 = vpop.f32.mrb[34].mxu0 }
 0xd44   :  { %v2987_v11 = vpop.f32.mrb[35].mxu0 }
 0xd45   :  { %v3203_v11 = vld [vmem:[%s3921_s8 + $0x40] sm:$0xff]  }
 0xdb8   :  { %v1940_v12 = vpop.f32.mrb[48].mxu1 }
 0xdb9   :  { %v1986_v13 = vpop.f32.mrb[36].mxu0  ;;  %v2992_v15 = vpop.f32.mrb[49].mxu1 }
 0xdba   :  { %v3106_v50 = vpack.i.bf16 %v1986_v13, %v1940_v12  ;;  %v2998_v16 = vpop.f32.mrb[37].mxu0  ;;  %v1943_v17 = vpop.f32.mrb[50].mxu1  ;;  %v3205_v12 = vld [vmem:[%s3921_s8 + $0x50] sm:$0xff]   ;;  %v3206_v13 = vld [vmem:[%s3921_s8 + $0x58] sm:$0xff]   ;;  %v3207_v15 = vld [vmem:[%s3921_s8 + $0x60] sm:$0xff]  }
 0xdbb   :  { %v1989_v18 = vpop.f32.mrb[38].mxu0  ;;  %v2993_v20 = vpop.f32.mrb[51].mxu1  ;;  %v3209_v16 = vld [vmem:[%s3921_s8 + $0x70] sm:$0xff]   ;;  %v3210_v17 = vld [vmem:[%s3921_s8 + $0x78] sm:$0xff]  }
 0xdbc   :  { %3107 = vrot.lane.b32.xlu0 %v3106_v50, %s3310_s0  ;;  %v2999_v21 = vpop.f32.mrb[39].mxu0  ;;  %v3208_v50 = vld [vmem:[%s3921_s8 + $0x68] sm:$0xff]   ;;  %v2667_v18 = vld [vmem:[%s3920_s7 + $0x1] ss:$0 sm:$0xff] }
 0xe2e   :  { %v3108_v22 = vpop.permute.xlu0 %3107 }
 0xe2f   :  { %v3110_v24 = vunpack.i.h.bf16 %v3108_v22  ;;  %v3109_v59 = vunpack.i.l.bf16 %v3108_v22 }
 0xe31   :  { %v2001_v27 = vsel %vm432_vm2, %v1894_v3, %v3110_v24  ;;  %v2000_v63 = vsel %vm432_vm2, %v1848_v61, %v3109_v59 }
 0xe32   :  { %v2002_v8 = vpack.c.bf16 %v2001_v27, %v2000_v63 }
 0xe34   :  { %3005 = vmatmul.mubr.msk.bf16.vlgmr.msra.gmra.mrb[52].mxu1 %vm889_vm4, %v2002_v8 }
 0xe35   :  { %3044 = vmatprep.mubr.msk.bf16.mxu1 %vm3308_vm0, %v3306_v0  ;;  %3029 = vmatpush3.bf16.msra.mxu1 %v3203_v11 }
 0xe36   :  { %3030 = vmatprep.subr.bf16.mxu1 %v3306_v0 }
 0xe39   :  { %3031 = vmatpush3.bf16.msra.mxu1 %v3204_v43 }
 0xe3a   :  { %3032 = vmatprep.subr.bf16.mxu1 %v3306_v0 }
 0xe3d   :  { %3033 = vmatpush3.bf16.msra.mxu1 %v3205_v12 }
 0xe3e   :  { %3034 = vmatprep.subr.bf16.mxu1 %v3306_v0 }
 0xe41   :  { %3035 = vmatpush3.bf16.msra.mxu1 %v3206_v13 }
 0xe42   :  { %3036 = vmatprep.subr.bf16.mxu1 %v3306_v0 }
 0xe45   :  { %3037 = vmatpush3.bf16.msra.mxu1 %v3207_v15 }
 0xe46   :  { %3038 = vmatprep.subr.bf16.mxu1 %v3306_v0 }
 0xe49   :  { %3039 = vmatpush3.bf16.msra.mxu1 %v3208_v50 }
 0xe4a   :  { %3040 = vmatprep.subr.bf16.mxu1 %v3306_v0 }
 0xe4d   :  { %3041 = vmatpush3.bf16.msra.mxu1 %v3209_v16 }
 0xe4e   :  { %3042 = vmatprep.subr.bf16.mxu1 %v3306_v0 }
 0xe51   :  { %3043 = vmatpush3.bf16.msra.mxu1 %v3210_v17 }
 0xf07   :  { %v2065_v62 = vpop.f32.mrb[52].mxu1 }
 0xf08   :  { %v2066_v26 = vadd.f32 %v2642_v28, %v2065_v62  ;;  %v3006_v58 = vpop.f32.mrb[53].mxu1 }
 0xf09   :  { %v2068_v29 = vpop.f32.mrb[54].mxu1 }
 0xf0a   :  { %v2072_v30 = vadd.f32 %v2066_v26, %v3680_v4  ;;  %v2069_v31 = vadd.f32 %v2642_v28, %v2068_v29  ;;  %v3007_v32 = vpop.f32.mrb[55].mxu1  ;;  %v3196_v4 = vld [vmem:[%s3919_s6 + $0x48] sm:$0xff]  }
 0xf0b   :  { %3011 = vmatpush3.bf16.msra.mxu0 %v3196_v4 }
 0xf0c   :  { %v2073_v33 = vadd.f32 %v2069_v31, %v3682_v5  ;;  %2078 = vadd.xlane.f32.xlu1 %v2072_v30  ;;  %v2084_v34 = vmul.f32 %v2072_v30, %v2072_v30  ;;  %3012 = vmatprep.subr.bf16.mxu0 %v3306_v0  ;;  %v3197_v5 = vld [vmem:[%s3919_s6 + $0x50] sm:$0xff]  }
 0xf0e   :  { %2080 = vadd.xlane.f32.xlu0 %v2073_v33  ;;  %v2085_v35 = vmul.f32 %v2073_v33, %v2073_v33 }
 0xf0f   :  { %3013 = vmatpush3.bf16.msra.mxu0 %v3197_v5 }
 0xf10   :  { %2086 = vadd.xlane.f32.xlu1 %v2084_v34  ;;  %3014 = vmatprep.subr.bf16.mxu0 %v3306_v0 }
 0xf12   :  { %2088 = vadd.xlane.f32.xlu0 %v2085_v35 }
 0xf13   :  { %3015 = vmatpush3.bf16.msra.mxu0 %v3198_v37 }
 0xf14   :  { %3016 = vmatprep.subr.bf16.mxu0 %v3306_v0 }
 0xf17   :  { %3017 = vmatpush3.bf16.msra.mxu0 %v3199_v38 }
 0xf18   :  { %3018 = vmatprep.subr.bf16.mxu0 %v3306_v0 }
 0xf1b   :  { %3019 = vmatpush3.bf16.msra.mxu0 %v3200_v39 }
 0xf1c   :  { %3020 = vmatprep.subr.bf16.mxu0 %v3306_v0 }
 0xf1f   :  { %3021 = vmatpush3.bf16.msra.mxu0 %v3201_v40  ;;  %v2693_v40 = vld [vmem:[%s3922_s9 + $0x1] ss:$0 sm:$0xff] }
 0xf20   :  { %3022 = vmatprep.subr.bf16.mxu0 %v3306_v0 }
 0xf23   :  { %3023 = vmatpush3.bf16.msra.mxu0 %v3202_v41 }
 0xf24   :  { %3048 = vmatprep.subr.bf16.mxu0 %v3306_v0 }
 0xf99   :  { %v2079_v42 = vpop.xlane.xlu1 %2078 }
 0xf9a   :  { %v2082_v44 = vmul.f32 0.03125, %v2079_v42 }
 0xf9b   :  { %v2081_v45 = vpop.xlane.xlu0 %2080 }
 0xf9c   :  { %v2083_v46 = vmul.f32 0.03125, %v2081_v45  ;;  %v2092_v25 = vmul.f32 %v2082_v44, %v2082_v44  ;;  %v2096_v49 = vsub.f32 %v2072_v30, %v2082_v44 }
 0xf9d   :  { %v2087_v23 = vpop.xlane.xlu1 %2086 }
 0xf9e   :  { %v2090_v60 = vmul.f32 0.03125, %v2087_v23  ;;  %v2093_v55 = vmul.f32 %v2083_v46, %v2083_v46  ;;  %v2097_v53 = vsub.f32 %v2073_v33, %v2083_v46 }
 0xf9f   :  { %v2089_v54 = vpop.xlane.xlu0 %2088 }
 0xfa0   :  { %v2094_v6 = vsub.f32 %v2090_v60, %v2092_v25  ;;  %v2091_v14 = vmul.f32 0.03125, %v2089_v54 }
 0xfa2   :  { %v2098_v19 = vadd.f32 1e-12, %v2094_v6  ;;  %v2095_v47 = vsub.f32 %v2091_v14, %v2093_v55  ;;  %v3211_v6 = vld [vmem:[%s3925_s12] sm:$0xff]   ;;  %v3212_v14 = vld [vmem:[%s3925_s12 + $0x8] sm:$0xff]  }
 0xfa4   :  { %3267 = vrsqrt.f32 %v2098_v19  ;;  %v2099_v48 = vadd.f32 1e-12, %v2095_v47  ;;  %v3213_v19 = vld [vmem:[%s3925_s12 + $0x10] sm:$0xff]   ;;  %v3214_v47 = vld [vmem:[%s3925_s12 + $0x18] sm:$0xff]  }
 0xfa6   :  { %3269 = vrsqrt.f32 %v2099_v48  ;;  %v3215_v48 = vld [vmem:[%s3925_s12 + $0x20] sm:$0xff]  }
 0xfae   :  { %v3268_v51 = vpop.eup %3267 }
 0xfaf   :  { %v2102_v56 = vmul.f32 %v3268_v51, %v2096_v49  ;;  %v3216_v49 = vld [vmem:[%s3925_s12 + $0x28] sm:$0xff]   ;;  %v3217_v51 = vld [vmem:[%s3925_s12 + $0x30] sm:$0xff]  }
 0xfb0   :  { %v3270_v57 = vpop.eup %3269 }
 0xfb1   :  { %v2103_v61 = vmul.f32 %v3270_v57, %v2097_v53  ;;  %v2110_v1 = vmul.f32 %v2648_v52, %v2102_v56 }
 0xfb3   :  { %v2111_v3 = vmul.f32 %v2648_v52, %v2103_v61  ;;  %v2118_v7 = vadd.f32 %v2649_v2, %v2110_v1  ;;  %v3218_v52 = vld [vmem:[%s3925_s12 + $0x38] sm:$0xff]  }
 0xfb5   :  { %v3824_v9 = vadd.f32 %v2649_v2, %v2111_v3 }
 0xfb7   :  { %v2120_v10 = vpack.c.bf16 %v3824_v9, %v2118_v7 }
 0xfb9   :  { %3025 = vmatmul.mubr.bf16.vlgmr.msra.gmra.mrb[40].mxu0 %v2120_v10 }
 0xfba   :  { %3064 = vmatprep.mubr.msk.bf16.mxu0 %vm3308_vm0, %v3306_v0  ;;  %3049 = vmatpush3.bf16.msra.mxu0 %v3211_v6 }
 0xfbb   :  { %3050 = vmatprep.subr.bf16.mxu0 %v3306_v0 }
 0xfbe   :  { %3051 = vmatpush3.bf16.msra.mxu0 %v3212_v14 }
 0xfbf   :  { %3052 = vmatprep.subr.bf16.mxu0 %v3306_v0 }
 0xfc2   :  { %3053 = vmatpush3.bf16.msra.mxu0 %v3213_v19 }
 0xfc3   :  { %3054 = vmatprep.subr.bf16.mxu0 %v3306_v0 }
 0xfc6   :  { %3055 = vmatpush3.bf16.msra.mxu0 %v3214_v47 }
 0xfc7   :  { %3056 = vmatprep.subr.bf16.mxu0 %v3306_v0 }
 0xfca   :  { %3057 = vmatpush3.bf16.msra.mxu0 %v3215_v48 }
 0xfcb   :  { %3058 = vmatprep.subr.bf16.mxu0 %v3306_v0 }
 0xfce   :  { %3059 = vmatpush3.bf16.msra.mxu0 %v3216_v49 }
 0xfcf   :  { %3060 = vmatprep.subr.bf16.mxu0 %v3306_v0 }
 0xfd2   :  { %3061 = vmatpush3.bf16.msra.mxu0 %v3217_v51 }
 0xfd3   :  { %3062 = vmatprep.subr.bf16.mxu0 %v3306_v0  ;;  %v2704_v0 = vld [vmem:[%s3923_s10 + $0x4] ss:$0 sm:$0xff] }
 0xfd6   :  { %3063 = vmatpush3.bf16.msra.mxu0 %v3218_v52 }
0x108c   :  { %v2228_v20 = vpop.f32.mrb[40].mxu0 }
0x108d   :  { %v2229_v21 = vadd.f32 %v2667_v18, %v2228_v20  ;;  %v3026_v22 = vpop.f32.mrb[41].mxu0 }
0x108e   :  { %v2231_v24 = vpop.f32.mrb[42].mxu0  ;;  %v2705_v22 = vld [vmem:[%s3924_s11 + $0x4] ss:$0 sm:$0xff] }
0x108f   :  { %v2237_v59 = vmul.f32 0.044715, %v2229_v21  ;;  %v2232_v27 = vadd.f32 %v2667_v18, %v2231_v24  ;;  %v3027_v63 = vpop.f32.mrb[43].mxu0  ;;  %v2235_v36 = vmul.f32 0.5, %v2229_v21 }
0x1091   :  { %v2239_v8 = vmul.f32 %v2237_v59, %v2229_v21  ;;  %v2238_v28 = vmul.f32 0.044715, %v2232_v27  ;;  %v2236_v4 = vmul.f32 0.5, %v2232_v27 }
0x1093   :  { %v2241_v62 = vmul.f32 %v2239_v8, %v2229_v21  ;;  %v2240_v26 = vmul.f32 %v2238_v28, %v2232_v27  ;;  %v2706_v8 = vld [vmem:[%s3926_s13] ss:$0 sm:$0xff] }
0x1095   :  { %v2243_v58 = vadd.f32 %v2241_v62, %v2229_v21  ;;  %v2242_v29 = vmul.f32 %v2240_v26, %v2232_v27 }
0x1097   :  { %v2245_v30 = vmul.f32 0.7978846, %v2243_v58  ;;  %v2244_v31 = vadd.f32 %v2242_v29, %v2232_v27 }
0x1099   :  { %3271 = vtanh.f32 %v2245_v30  ;;  %v2246_v32 = vmul.f32 0.7978846, %v2244_v31 }
0x109b   :  { %3273 = vtanh.f32 %v2246_v32 }
0x10a3   :  { %v3272_v33 = vpop.eup %3271 }
0x10a4   :  { %v2249_v34 = vadd.f32 1.0, %v3272_v33 }
0x10a5   :  { %v3274_v35 = vpop.eup %3273 }
0x10a6   :  { %v2250_v5 = vadd.f32 1.0, %v3274_v35  ;;  %v2251_v37 = vmul.f32 %v2249_v34, %v2235_v36 }
0x10a8   :  { %v2252_v38 = vmul.f32 %v2250_v5, %v2236_v4 }
0x10aa   :  { %v2253_v39 = vpack.c.bf16 %v2252_v38, %v2251_v37 }
0x10ac   :  { %3045 = vmatmul.mubr.bf16.vlgmr.msra.gmra.mrb[56].mxu1 %v2253_v39 }
0x117f   :  { %v2361_v41 = vpop.f32.mrb[56].mxu1 }
0x1180   :  { %v2362_v42 = vadd.f32 %v2693_v40, %v2361_v41  ;;  %v3046_v44 = vpop.f32.mrb[57].mxu1 }
0x1181   :  { %v2364_v45 = vpop.f32.mrb[58].mxu1 }
0x1182   :  { %v2368_v46 = vadd.f32 %v2362_v42, %v2118_v7  ;;  %v2365_v23 = vadd.f32 %v2693_v40, %v2364_v45  ;;  %v3047_v25 = vpop.f32.mrb[59].mxu1 }
0x1184   :  { %v2369_v60 = vadd.f32 %v2365_v23, %v3824_v9  ;;  %2374 = vadd.xlane.f32.xlu1 %v2368_v46  ;;  %v2380_v54 = vmul.f32 %v2368_v46, %v2368_v46 }
0x1186   :  { %2376 = vadd.xlane.f32.xlu0 %v2369_v60  ;;  %v2381_v55 = vmul.f32 %v2369_v60, %v2369_v60 }
0x1188   :  { %2382 = vadd.xlane.f32.xlu1 %v2380_v54 }
0x118a   :  { %2384 = vadd.xlane.f32.xlu0 %v2381_v55 }
0x1211   :  { %v2375_v53 = vpop.xlane.xlu1 %2374 }
0x1212   :  { %v2378_v56 = vmul.f32 0.03125, %v2375_v53 }
0x1213   :  { %v2377_v57 = vpop.xlane.xlu0 %2376 }
0x1214   :  { %v2379_v61 = vmul.f32 0.03125, %v2377_v57  ;;  %v2388_v2 = vmul.f32 %v2378_v56, %v2378_v56  ;;  %v2392_v15 = vsub.f32 %v2368_v46, %v2378_v56 }
0x1215   :  { %v2383_v1 = vpop.xlane.xlu1 %2382 }
0x1216   :  { %v2386_v3 = vmul.f32 0.03125, %v2383_v1  ;;  %v2389_v9 = vmul.f32 %v2379_v61, %v2379_v61  ;;  %v2393_v16 = vsub.f32 %v2369_v60, %v2379_v61 }
0x1217   :  { %v2385_v7 = vpop.xlane.xlu0 %2384 }
0x1218   :  { %v2390_v10 = vsub.f32 %v2386_v3, %v2388_v2  ;;  %v2387_v11 = vmul.f32 0.03125, %v2385_v7 }
0x121a   :  { %v2394_v43 = vadd.f32 1e-12, %v2390_v10  ;;  %v2391_v12 = vsub.f32 %v2387_v11, %v2389_v9 }
0x121c   :  { %3275 = vrsqrt.f32 %v2394_v43  ;;  %v2395_v13 = vadd.f32 1e-12, %v2391_v12 }
0x121e   :  { %3277 = vrsqrt.f32 %v2395_v13 }
0x1226   :  { %v3276_v50 = vpop.eup %3275 }
0x1227   :  { %v2398_v17 = vmul.f32 %v3276_v50, %v2392_v15 }
0x1228   :  { %v3278_v18 = vpop.eup %3277 }
0x1229   :  { %v2399_v20 = vmul.f32 %v3278_v18, %v2393_v16  ;;  %v2406_v21 = vmul.f32 %v2704_v0, %v2398_v17 }
0x122b   :  { %v2407_v24 = vmul.f32 %v2704_v0, %v2399_v20  ;;  %v2414_v59 = vadd.f32 %v2705_v22, %v2406_v21 }
0x122d   :  { %v2415_v27 = vadd.f32 %v2705_v22, %v2407_v24 }
0x122f   :  { %v2416_v63 = vpack.c.bf16 %v2415_v27, %v2414_v59 }
0x1231   :  { %3065 = vmatmul.mubr.bf16.vlgmr.msra.gmra.mrb[44].mxu0 %v2416_v63 }
0x1304   :  { %v2522_v28 = vpop.f32.mrb[44].mxu0 }
0x1305   :  { %v2523_v62 = vadd.f32 %v2706_v8, %v2522_v28  ;;  %v3066_v26 = vpop.f32.mrb[45].mxu0 }
0x1306   :  { %v2525_v58 = vpop.f32.mrb[46].mxu0 }
0x1307   :  { %2529 = vst [vmem:[%s3927_s14] sm:$0xff] %v2523_v62  ;;  %v2526_v29 = vadd.f32 %v2706_v8, %v2525_v58  ;;  %v3067_v30 = vpop.f32.mrb[47].mxu0 }
0x1309   :  { %2530 = vst [vmem:[%s3927_s14 + $0x8] sm:$0xff] %v2526_v29 }
0x130a   :  { %2535 = vsyncpa [#allocation3], 1 }

</bundles_post_ra>
